<compile_context>
chip_gen: v5e
topology: v5e:2x2
jax: 0.10.0
libtpu: 0.0.40
codegen_flags: <defaults>
</compile_context>

<pallas_src>
import jax
import jax.numpy as jnp
from jax.experimental import pallas as pl
from jax.experimental.pallas import tpu as pltpu


def gcn_kernel(support_ref, adj_ref, b_ref, o_ref, acc_ref, deg_ref):
    k = pl.program_id(1)

    @pl.when(k == 0)
    def _init():
        acc_ref[...] = jnp.zeros_like(acc_ref)
        deg_ref[...] = jnp.zeros_like(deg_ref)

    # int8 {0,1} tile -> bf16 (exact); cast hides under the MXU work.
    adj_bf16 = adj_ref[...].astype(jnp.bfloat16)

    # Exact degree accumulation in f32 (XLU-slot lane reduce, effectively free).
    deg_ref[...] += jnp.sum(
        adj_bf16.astype(jnp.float32), axis=-1, keepdims=True)

    # Dominant matmul: bf16 x bf16 on the MXU, f32 accumulation in VMEM scratch.
    acc_ref[...] += jnp.dot(
        adj_bf16, support_ref[...], preferred_element_type=jnp.float32)

    @pl.when(k == pl.num_programs(1) - 1)
    def _finalize():
        # Exact division once per row tile (perf-neutral vs. approx recip).
        out = acc_ref[...] / deg_ref[...] + b_ref[...]
        o_ref[...] = jnp.maximum(out, 0.0).astype(o_ref.dtype)


def graph_convolution(x, adj, weight, bias, *, tm=512, tk=512):
    """x: (N, f_in), adj: (N, N) with {0,1} entries, weight: (f_in, f_out),
    bias: (f_out,).

    Defaults tm=tk=512 suit all generations (VMEM use ~1.5 MiB).  On v7x,
    pick tm such that N // tm >= 2 so both TensorCores get row tiles.
    If adj is reused across layers / steps, hoist the int8 cast of adj out of
    this wrapper and amortize it.
    """
    N, f_in = x.shape
    f_out = weight.shape[1]

    tm = min(tm, N)
    tk = min(tk, N)
    assert N % tm == 0 and N % tk == 0, "N must be divisible by tile sizes"

    # Hoisted prologue: support = x @ W computed ONCE (f32), cast to bf16 for
    # the MXU-rate main matmul.  This is O(N * f_in * f_out) — tiny vs. the
    # O(N^2 * f_out) adj matmul — so plain XLA is fine here.
    support = jnp.dot(
        x.astype(jnp.float32), weight.astype(jnp.float32),
        preferred_element_type=jnp.float32).astype(jnp.bfloat16)     # (N, f_out)

    # {0,1} adjacency -> int8: exact, and half the HBM/DMA bytes of bf16.
    adj_i8 = adj.astype(jnp.int8)                                    # (N, N)
    bias2d = bias.reshape(1, f_out).astype(jnp.float32)

    grid = (N // tm, N // tk)   # (row tiles, reduction tiles) — reduction last

    return pl.pallas_call(
        gcn_kernel,
        out_shape=jax.ShapeDtypeStruct((N, f_out), jnp.float32),
        grid_spec=pltpu.PrefetchScalarGridSpec(
            num_scalar_prefetch=0,
            grid=grid,
            in_specs=[
                pl.BlockSpec((tk, f_out), lambda i, k: (k, 0)),   # support rows of block k
                pl.BlockSpec((tm, tk), lambda i, k: (i, k)),      # adj tile (int8)
                pl.BlockSpec((1, f_out), lambda i, k: (0, 0)),    # bias (resident)
            ],
            out_specs=pl.BlockSpec((tm, f_out), lambda i, k: (i, 0)),
            scratch_shapes=[
                pltpu.VMEM((tm, f_out), jnp.float32),             # output accumulator
                pltpu.VMEM((tm, 1), jnp.float32),                 # degree accumulator
            ],
        ),
        compiler_params=pltpu.CompilerParams(
            dimension_semantics=("parallel", "arbitrary"),
        ),
    )(support, adj_i8, bias2d)


def gcn_reference(x, adj, weight, bias):
    support = x @ weight
    out = adj @ support
    deg = adj.sum(axis=-1, keepdims=True)
    out = out / deg
    out = out + bias
    return jnp.maximum(out, 0.0)


if __name__ == "__main__":
    # Shapes large enough to exercise the tiling (grid = (2, 2)) yet small.
    N, F_IN, F_OUT = 512, 128, 128
    TM, TK = 256, 256   # N // tm = 2 row tiles keeps both v7x TensorCores busy

    key = jax.random.PRNGKey(0)
    k_x, k_adj, k_w = jax.random.split(key, 3)

    # Node features.
    x = jax.random.normal(k_x, (N, F_IN), dtype=jnp.float32)

    # Random binary adjacency + self loops (guarantees nonzero degrees).
    adj = (jax.random.uniform(k_adj, (N, N)) < 0.2).astype(jnp.float32)
    adj = jnp.maximum(adj, jnp.eye(N, dtype=jnp.float32))

    # Deterministic parameter init matching the module:
    # kaiming_uniform_ (relu): bound = sqrt(2) * sqrt(3 / fan_in); PyTorch's
    # fan_in for a (f_in, f_out) tensor is f_out.
    bound = jnp.sqrt(2.0) * jnp.sqrt(3.0 / F_OUT)
    weight = jax.random.uniform(
        k_w, (F_IN, F_OUT), dtype=jnp.float32, minval=-bound, maxval=bound
    )
    bias = jnp.zeros((F_OUT,), dtype=jnp.float32)  # nn.init.zeros_

    out = graph_convolution(x, adj, weight, bias, tm=TM, tk=TK)
    out = jax.block_until_ready(out)

    ref = gcn_reference(x, adj, weight, bias)
    assert out.shape == (N, F_OUT)
    # Tolerance vs. pure-f32 reference: bf16 support cast (~2^-9 relative per
    # product, f32-accumulated); degrees and division are exact.
    assert jnp.allclose(out, ref, atol=1e-2, rtol=1e-2), (
        float(jnp.max(jnp.abs(out - ref))))

    print("KERNEL_OK")
</pallas_src>

<mosaic_0001>
module attributes {stable_mosaic.version = 11 : i64} {
  func.func @gcn_kernel(%arg0: i32, %arg1: i32, %arg2: memref<256x128xbf16, #tpu.memory_space<vmem>>, %arg3: memref<256x256xi8, #tpu.memory_space<vmem>>, %arg4: memref<1x128xf32, #tpu.memory_space<vmem>>, %arg5: memref<256x128xf32, #tpu.memory_space<vmem>>, %arg6: memref<256x128xf32, #tpu.memory_space<vmem>>, %arg7: memref<256x1xf32, #tpu.memory_space<vmem>>) attributes {dimension_semantics = [#tpu.dimension_semantics<parallel>, #tpu.dimension_semantics<arbitrary>], iteration_bounds = array<i64: 2, 2>, scalar_prefetch = 0 : i64, scratch_operands = 2 : i64, tpu.core_type = #tpu.core_type<tc>, window_params = [{transform_indices = @transform_0, window_bounds = array<i64: 256, 128>}, {transform_indices = @transform_1, window_bounds = array<i64: 256, 256>}, {pipeline_mode = #tpu.pipeline_mode<synchronous>, transform_indices = @transform_2, window_bounds = array<i64: 1, 128>}, {transform_indices = @transform_3, window_bounds = array<i64: 256, 128>}]} {
    %c0_i32 = arith.constant 0 : i32
    %0 = arith.cmpi eq, %arg1, %c0_i32 : i32
    %1 = arith.extui %0 : i1 to i32
    %c0_i32_0 = arith.constant 0 : i32
    %2 = arith.cmpi ne, %1, %c0_i32_0 : i32
    scf.if %2 {
      %cst_14 = arith.constant 0.000000e+00 : f32
      %19 = vector.broadcast %cst_14 : f32 to vector<256x128xf32>
      %c0_15 = arith.constant 0 : index
      %c0_16 = arith.constant 0 : index
      %20 = vector.load %arg6[%c0_15, %c0_16] : memref<256x128xf32, #tpu.memory_space<vmem>>, vector<256x128xf32>
      tpu.vector_store %arg6[%c0_15, %c0_16], %19 {strides = array<i32>} : memref<256x128xf32, #tpu.memory_space<vmem>>, vector<256x128xf32>,
      %cst_17 = arith.constant 0.000000e+00 : f32
      %21 = vector.broadcast %cst_17 : f32 to vector<256x1xf32>
      %c0_18 = arith.constant 0 : index
      %c0_19 = arith.constant 0 : index
      %22 = vector.load %arg7[%c0_18, %c0_19] : memref<256x1xf32, #tpu.memory_space<vmem>>, vector<256x1xf32>
      tpu.vector_store %arg7[%c0_18, %c0_19], %21 {strides = array<i32>} : memref<256x1xf32, #tpu.memory_space<vmem>>, vector<256x1xf32>,
    } else {
    }
    %c0 = arith.constant 0 : index
    %c0_1 = arith.constant 0 : index
    %3 = vector.load %arg3[%c0, %c0_1] : memref<256x256xi8, #tpu.memory_space<vmem>>, vector<256x256xi8>
    %4 = arith.sitofp %3 : vector<256x256xi8> to vector<256x256xbf16>
    %c0_2 = arith.constant 0 : index
    %c0_3 = arith.constant 0 : index
    %5 = vector.load %arg7[%c0_2, %c0_3] : memref<256x1xf32, #tpu.memory_space<vmem>>, vector<256x1xf32>
    %6 = arith.extf %4 : vector<256x256xbf16> to vector<256x256xf32>
    %cst = arith.constant dense<0.000000e+00> : vector<256xf32>
    %7 = vector.multi_reduction <add>, %6, %cst [1] : vector<256x256xf32> to vector<256xf32>
    %8 = vector.shape_cast %7 : vector<256xf32> to vector<256x1xf32>
    %9 = arith.addf %5, %8 : vector<256x1xf32>
    %c0_4 = arith.constant 0 : index
    %c0_5 = arith.constant 0 : index
    %10 = vector.load %arg7[%c0_4, %c0_5] : memref<256x1xf32, #tpu.memory_space<vmem>>, vector<256x1xf32>
    tpu.vector_store %arg7[%c0_4, %c0_5], %9 {strides = array<i32>} : memref<256x1xf32, #tpu.memory_space<vmem>>, vector<256x1xf32>,
    %c0_6 = arith.constant 0 : index
    %c0_7 = arith.constant 0 : index
    %11 = vector.load %arg6[%c0_6, %c0_7] : memref<256x128xf32, #tpu.memory_space<vmem>>, vector<256x128xf32>
    %c0_8 = arith.constant 0 : index
    %c0_9 = arith.constant 0 : index
    %12 = vector.load %arg2[%c0_8, %c0_9] : memref<256x128xbf16, #tpu.memory_space<vmem>>, vector<256x128xbf16>
    %cst_10 = arith.constant dense<0.000000e+00> : vector<256x128xf32>
    %13 = tpu.matmul %4, %12, %cst_10 {dimension_numbers = #tpu.dot_dimension_numbers<[1], [0], [0], [1], [0, 0, 1, 1], [], []>} : vector<256x256xbf16>, vector<256x128xbf16>, vector<256x128xf32> -> vector<256x128xf32>
    %14 = arith.addf %11, %13 : vector<256x128xf32>
    %c0_11 = arith.constant 0 : index
    %c0_12 = arith.constant 0 : index
    %15 = vector.load %arg6[%c0_11, %c0_12] : memref<256x128xf32, #tpu.memory_space<vmem>>, vector<256x128xf32>
    tpu.vector_store %arg6[%c0_11, %c0_12], %14 {strides = array<i32>} : memref<256x128xf32, #tpu.memory_space<vmem>>, vector<256x128xf32>,
    %c1_i32 = arith.constant 1 : i32
    %16 = arith.cmpi eq, %arg1, %c1_i32 : i32
    %17 = arith.extui %16 : i1 to i32
    %c0_i32_13 = arith.constant 0 : i32
    %18 = arith.cmpi ne, %17, %c0_i32_13 : i32
    scf.if %18 {
      %c0_14 = arith.constant 0 : index
      %c0_15 = arith.constant 0 : index
      %19 = vector.load %arg6[%c0_14, %c0_15] : memref<256x128xf32, #tpu.memory_space<vmem>>, vector<256x128xf32>
      %c0_16 = arith.constant 0 : index
      %c0_17 = arith.constant 0 : index
      %20 = vector.load %arg7[%c0_16, %c0_17] : memref<256x1xf32, #tpu.memory_space<vmem>>, vector<256x1xf32>
      %21 = vector.broadcast %20 : vector<256x1xf32> to vector<256x128xf32>
      %22 = arith.divf %19, %21 : vector<256x128xf32>
      %c0_18 = arith.constant 0 : index
      %c0_19 = arith.constant 0 : index
      %23 = vector.load %arg4[%c0_18, %c0_19] : memref<1x128xf32, #tpu.memory_space<vmem>>, vector<1x128xf32>
      %24 = vector.broadcast %23 : vector<1x128xf32> to vector<256x128xf32>
      %25 = arith.addf %22, %24 : vector<256x128xf32>
      %cst_20 = arith.constant 0.000000e+00 : f32
      %26 = vector.broadcast %cst_20 : f32 to vector<256x128xf32>
      %27 = arith.maximumf %25, %26 : vector<256x128xf32>
      %c0_21 = arith.constant 0 : index
      %c0_22 = arith.constant 0 : index
      %28 = vector.load %arg5[%c0_21, %c0_22] : memref<256x128xf32, #tpu.memory_space<vmem>>, vector<256x128xf32>
      tpu.vector_store %arg5[%c0_21, %c0_22], %27 {strides = array<i32>} : memref<256x128xf32, #tpu.memory_space<vmem>>, vector<256x128xf32>,
    } else {
    }
    return
  }
  func.func @transform_0(%arg0: i32, %arg1: i32) -> (i32, i32) {
    %c0_i32 = arith.constant 0 : i32
    %c0_i32_0 = arith.constant 0 : i32
    return %arg1, %c0_i32 : i32, i32
  }
  func.func @transform_1(%arg0: i32, %arg1: i32) -> (i32, i32) {
    %c0_i32 = arith.constant 0 : i32
    return %arg0, %arg1 : i32, i32
  }
  func.func @transform_2(%arg0: i32, %arg1: i32) -> (i32, i32) {
    %c0_i32 = arith.constant 0 : i32
    %c0_i32_0 = arith.constant 0 : i32
    %c0_i32_1 = arith.constant 0 : i32
    return %c0_i32, %c0_i32_0 : i32, i32
  }
  func.func @transform_3(%arg0: i32, %arg1: i32) -> (i32, i32) {
    %c0_i32 = arith.constant 0 : i32
    %c0_i32_0 = arith.constant 0 : i32
    return %arg0, %c0_i32 : i32, i32
  }
}

</mosaic_0001>

<bundles_post_ra>
// kernel: tpu_custom_call.1
= control target key start
LH: loop header
LB: loop body
LE: loop exit
PB: predicated region body
PF: predicated region fallthrough
CT: control target
= control target key end

     0   :  { %s3706_s0 = inlined_call_operand.hbm [shape: bf16[512,128], index: 0, kind: input, shape index: {}]   ;;  %s3707_s1 = inlined_call_operand.hbm [shape: s8[512,512], index: 1, kind: input, shape index: {}]   ;;  %s3708_s2 = inlined_call_operand.vmem [shape: f32[1,128], index: 2, kind: input, shape index: {}]   ;;  %s3709_s3 = inlined_call_operand.hbm [shape: f32[512,128], index: 3, kind: output, shape index: {}]  }
   0x1   :  { %3721 = sst [smem:[#allocation22_spill]] %s3706_s0 }
   0x2   :  { %3722 = sst [smem:[#allocation23_spill]] %s3708_s2 }
   0x3   :  { %3723 = sst [smem:[#allocation24_spill]] %s3709_s3 }
   0x4   :  { %8 = vsyncpa [#allocation5], 0 }
   0x5   :  { %10 = vsyncpa [#allocation5 + $0x1], 0 }
   0x6   :  { %11 = vsyncpa [#allocation8], 0 }
   0x7   :  { %13 = vsyncpa [#allocation8 + $0x1], 0 }
   0x8   :  { %14 = vsyncpa [#allocation6], 0 }
   0x9   :  { %16 = vsyncpa [#allocation6 + $0x1], 0  ;;  %s2664_s12 = smov 0   ;;  %s2666_s13 = smov 0  }
   0xa   :  { %s2668_s14 = smov 0   ;;  %s2670_s15 = smov 0  }
   0xb   :  { %s2672_s16 = smov 0   ;;  %s2674_s17 = smov 0  }
   0xc   :  { %s2676_s18 = smov 0   ;;  %s2678_s19 = smov 0  }
   0xd   :  { %s2680_s20 = smov 0   ;;  %s2682_s21 = smov 0  }
   0xe   :  { %s2684_s22 = smov 0   ;;  %s2686_s23 = smov 0  }
   0xf   :  { %s2688_s24 = smov 0   ;;  %s2690_s25 = smov 0  }
  0x10 LB: > { %3724 = sst [smem:[#allocation13_spill]] %s2581_s12  ;;  %s2092_s26 = sadd.s32 4294967295, %s2633_s25   ;;  %s2633_s25 = sphi %s2690_s25, %s22_s25   ;;  %s2629_s24 = sphi %s2688_s24, %s3813_s24   ;;  %s2625_s23 = sphi %s2686_s23, %s3812_s23   ;;  %s2621_s22 = sphi %s2684_s22, %s3811_s22   ;;  %s2617_s21 = sphi %s2682_s21, %s3810_s21   ;;  %s2613_s20 = sphi %s2680_s20, %s3801_s20   ;;  %s2609_s19 = sphi %s2678_s19, %s3809_s19   ;;  %s2605_s18 = sphi %s2676_s18, %s3808_s18   ;;  %s2601_s17 = sphi %s2674_s17, %s3807_s17   ;;  %s2597_s16 = sphi %s2672_s16, %s3806_s16   ;;  %s2593_s15 = sphi %s2670_s15, %s3805_s15   ;;  %s2589_s14 = sphi %s2668_s14, %s3804_s14   ;;  %s2585_s13 = sphi %s2666_s13, %s3803_s13   ;;  %s2581_s12 = sphi %s2664_s12, %s3799_s12  }
  0x11   : > { %3725 = sst [smem:[#allocation14_spill]] %s2585_s13  ;;  %s2093_s27 = sadd.s32 4294967294, %s2633_s25  }
  0x12   : > { %3726 = sst [smem:[#allocation15_spill]] %s2613_s20  ;;  %s31_s28 = sadd.s32 1, %s2625_s23 }
  0x13   : > { %3727 = sst [smem:[#allocation16_spill]] %s2617_s21  ;;  %s41_s29 = sadd.s32 1, %s2613_s20 }
  0x14   : > { %3728 = sst [smem:[#allocation17_spill]] %s2621_s22  ;;  %p2736_p0 = scmp.ge.s32.totalorder %s31_s28, 2 }
  0x15   : > { %p48_p1 = scmp.ne.s32.totalorder %s2613_s20, %s2609_s19  ;;  %p49_p2 = scmp.eq.s32.totalorder %s2633_s25, 0 }
  0x16   : > { %p54_p3 = scmp.ne.s32.totalorder %s2609_s19, %s2605_s18  ;;  %s3815_s28 = smov (%p2736_p0, %s31_s28), 0 }
  0x17   : > { %3730 = sst [smem:[#allocation18_spill]] %s3815_s28  ;;  %p2750_p4 = por %p49_p2, %p48_p1 }
  0x18   : > { %p2754_p5 = scmp.eq.s32.totalorder %s2092_s26, 0  ;;  %s2760_s6 = ssub.s32 %s2625_s23, %s3815_s28 }
  0x19   : > { %p126_p6 = scmp.ne.s32.totalorder %s2589_s14, %s2585_s13  ;;  %p39_p7 = scmp.eq.s32.totalorder %s2760_s6, 0 }
  0x1a   : > { %p2767_p8 = por %p2754_p5, %p54_p3  ;;  %p127_p9 = scmp.eq.s32.totalorder %s2092_s26, 3 }
  0x1b   : > { %p132_p10 = scmp.ne.s32.totalorder %s2585_s13, %s2581_s12  ;;  %p133_p12 = scmp.eq.s32.totalorder %s2093_s27, 3 }
  0x1c   : > { %s2774_s8 = scalar_select %p39_p7, %s2613_s20, %s41_s29  }
  0x1d   : > { %p2776_p11 = por %p127_p9, %p126_p6  ;;  %p3713_p13 = scmp.lt.s32.totalorder %s2633_s25, 4 }
  0x1e   : > { %3734 = sst [smem:[#allocation19_spill]] %s2774_s8  ;;  %p2781_p1 = por %p133_p12, %p132_p10 }
  0x1f   : > { %s3735_s9 = scalar_select %p2776_p11, 1, 0 }
  0x20   : > { %s3737_s10 = scalar_select %p2781_p1, 1, 0 }
  0x21   : > { %3736 = sst [smem:[#allocation20_spill]] %s3735_s9  ;;  %s156_s11 = sand.u32 1, %s2613_s20  }
  0x22   : > { %3738 = sst [smem:[#allocation21_spill]] %s3737_s10  ;;  %s2096_s18 = sshll.u32 %s156_s11, 7 }
  0x23   : > { %s2179_s26 = sshll.u32 %s2625_s23, 7  ;;  %s3739_s0 = sld [smem:[#allocation22_spill]] }
  0x24   : > { %s160_s8 = scalar_lea.vmem [#allocation4], %s2096_s18  ;;  %p2221_p3 = pnand %p3713_p13, %p2750_p4 }
  0x25   : > { %s168_s27 = sshll.u32 %s160_s8, 4  ;;  %p2104_p6 = scmp.ge.s32.totalorder %s2633_s25, 1  ;;  %s169_s27 = int_to_ptr.vmem [resolvable:$true] %s168_s27 }
  0x26   : > { %s157_s12 = scalar_lea.sflag [#allocation5], %s156_s11  ;;  %s2635_s28 = smov 64  }
  0x27   : > { %s2636_s18 = smov 4   ;;  %p201_p7 = scmp.lt.s32.totalorder %s2633_s25, 5 }
  0x28   : > { %s69_s4 = sadd.s32 1, %s2601_s17  ;;  %p76_p4 = scmp.ne.s32.totalorder %s2601_s17, %s2597_s16 }
  0x29   : > { %s165_s29 = scalar_lea.hbm %s3739_s0, %s2179_s26  ;;  %p2796_p9 = pnand %p2104_p6, %p201_p7 }
  0x2a   : > { %s166_s3 = sshll.u32 %s165_s29, 4  ;;  %s34_s26 = sadd.s32 1, %s2629_s24  ;;  %s167_s3 = int_to_ptr.hbm [resolvable:$true] %s166_s3 }
  0x2b   : > { %2223 = dma.hbm_to_vmem [thread:$0]  (!%p2221_p3), %s167_s3, 2048, %s169_s27, %s157_s12, %s2635_s28, %s2635_s28, %s2636_s18  }
  0x2c   : > { %s3817_s26 = smov (!%p2736_p0, %s34_s26), %s2629_s24  ;;  %p82_p10 = scmp.ne.s32.totalorder %s2597_s16, %s2593_s15 }
  0x2d   : > { %p36_p12 = scmp.ge.s32.totalorder %s3817_s26, 2  ;;  %s116_s11 = sadd.s32 1, %s2589_s14 }
  0x2e   : > { %p2812_p13 = por %p76_p4, %p49_p2  ;;  %p2818_p3 = por %p82_p10, %p2754_p5 }
  0x2f   : > { %s3819_s26 = smov (%p36_p12, %s3817_s26), 0  ;;  %s178_s30 = sand.u32 1, %s2601_s17  }
  0x30   : > { %s2101_s27 = sshll.u32 %s2625_s23, 1  ;;  %s64_s15 = ssub.s32 %s2629_s24, %s3819_s26 }
  0x31   : > { %s66_s12 = sor.u32 %s64_s15, %s2760_s6  ;;  %p114_p0 = scmp.eq.s32.totalorder %s64_s15, 0 }
  0x32   : > { %p67_p6 = scmp.eq.s32.totalorder %s66_s12, 0  ;;  %s2099_s28 = sshll.u32 %s178_s30, 7 }
  0x33   : > { %s2830_s18 = scalar_select %p114_p0, %s2589_s14, %s116_s11  }
  0x34   : > { %s2833_s0 = scalar_select %p67_p6, %s2601_s17, %s69_s4  }
  0x35   : > { %s2180_s5 = sshll.u32 %s2629_s24, 5  ;;  %s182_s10 = scalar_lea.vmem [#allocation7], %s2099_s28 }
  0x36   : > { %s188_s20 = sadd.s32 %s2180_s5, %s2101_s27  ;;  %s193_s9 = sshll.u32 %s182_s10, 4  ;;  %s194_s9 = int_to_ptr.vmem [resolvable:$true] %s193_s9 }
  0x37   : > { %s2103_s22 = sshll.u32 %s188_s20, 3  ;;  %p3743_p2 = scmp.lt.s32.totalorder %s2633_s25, 4 }
  0x38   : > { %s190_s13 = scalar_lea.hbm %s3707_s1, %s2103_s22  ;;  %s179_s15 = scalar_lea.sflag [#allocation8], %s178_s30 }
  0x39   : > { %p2224_p5 = pnand %p3743_p2, %p2812_p13  ;;  %s191_s6 = sshll.u32 %s190_s13, 4  ;;  %s192_s6 = int_to_ptr.hbm [resolvable:$true] %s191_s6 }
  0x3a   : > { %s2637_s11 = smov 512   ;;  %s2638_s12 = smov 256  }
  0x3b   : > { %s2639_s4 = smov 16   ;;  %205 = sbr.rel (%p2796_p9) target bundleno = 705 (0x2c1), region = 32 }
  0x3c   : > { %2226 = dma.hbm_to_vmem [thread:$0]  (!%p2224_p5), %s192_s6, 2048, %s194_s9, %s179_s15, %s2637_s11, %s2638_s12, %s2639_s4  }
  0x3d   : > { %s207_s20 = sand.u32 (!%p2796_p9), 1, %s2609_s19  }
  0x3e   : > { %s2105_s10 = sshll.u32 (!%p2796_p9), %s207_s20, 7  ;;  %s208_s27 = scalar_lea.sflag (!%p2796_p9), [#allocation5], %s207_s20 }
  0x3f   : > { %s2846_s2 = scalar_lea.vmem (!%p2796_p9), [#allocation4], %s2105_s10 }
  0x40   : > { %2568 = dma.done.wait (%p2767_p8), %s208_s27, 2048  }
  0x41   : > { %2570 = vsyncadd (%p2767_p8), %s208_s27, 4294965248  ;;  %s217_s13 = sand.u32 1, %s2597_s16  }
  0x42   : > { %s2106_s21 = sshll.u32 %s217_s13, 7  ;;  %s218_s22 = scalar_lea.sflag [#allocation8], %s217_s13 }
  0x43   : > { %s2853_s9 = scalar_lea.vmem [#allocation7], %s2106_s21 }
  0x44   : > { %2572 = dma.done.wait (%p2818_p3), %s218_s22, 2048  }
  0x45   : > { %2574 = vsyncadd (%p2818_p3), %s218_s22, 4294965248  ;;  %s3744_s8 = sld [smem:[#allocation14_spill]] }
  0x46   : > { %s3745_s7 = sld [smem:[#allocation16_spill]] }
  0x4b   : > { %s247_s3 = sand.u32 1, %s3744_s8  }
  0x4c   : > { %s2107_s30 = sshll.u32 %s247_s3, 8  ;;  %p2108_p8 = scmp.ne.s32.totalorder %s3745_s7, 0 }
  0x4d   : > { %s2862_s28 = scalar_lea.vmem [#allocation9], %s2107_s30 }
  0x4e   : > { %257 = sbr.rel (%p2108_p8) target bundleno = 148 (0x94), region = 44 }
  0x53   : > { %v2640_v0 = vmov 0.0   ;;  %vm290_vm0 = vcmask 7168  }
  0x54   : > { %258 = vst [vmem:[#allocation2 + $0xb0] sm:$0xff] %v2640_v0 }
  0x55   : > { %259 = vst [vmem:[#allocation2] sm:$0xff] %v2640_v0 }
  0x56   : > { %260 = vst [vmem:[#allocation2 + $0xd8] sm:$0xff] %v2640_v0 }
  0x57   : > { %261 = vst [vmem:[#allocation2 + $0x18] sm:$0xff] %v2640_v0 }
  0x58   : > { %262 = vst [vmem:[#allocation2 + $0x50] sm:$0xff] %v2640_v0 }
  0x59   : > { %263 = vst [vmem:[#allocation2 + $0x68] sm:$0xff] %v2640_v0 }
  0x5a   : > { %264 = vst [vmem:[#allocation2 + $0x30] sm:$0xff] %v2640_v0 }
  0x5b   : > { %265 = vst [vmem:[#allocation2 + $0x48] sm:$0xff] %v2640_v0 }
  0x5c   : > { %266 = vst [vmem:[#allocation2 + $0x80] sm:$0xff] %v2640_v0 }
  0x5d   : > { %267 = vst [vmem:[#allocation2 + $0x88] sm:$0xff] %v2640_v0 }
  0x5e   : > { %268 = vst [vmem:[#allocation2 + $0xe8] sm:$0xff] %v2640_v0 }
  0x5f   : > { %269 = vst [vmem:[#allocation2 + $0xb8] sm:$0xff] %v2640_v0 }
  0x60   : > { %270 = vst [vmem:[#allocation2 + $0x60] sm:$0xff] %v2640_v0 }
  0x61   : > { %271 = vst [vmem:[#allocation2 + $0xf0] sm:$0xff] %v2640_v0 }
  0x62   : > { %272 = vst [vmem:[#allocation2 + $0x8] sm:$0xff] %v2640_v0 }
  0x63   : > { %273 = vst [vmem:[#allocation2 + $0x78] sm:$0xff] %v2640_v0 }
  0x64   : > { %274 = vst [vmem:[#allocation2 + $0x38] sm:$0xff] %v2640_v0 }
  0x65   : > { %275 = vst [vmem:[#allocation2 + $0x58] sm:$0xff] %v2640_v0 }
  0x66   : > { %276 = vst [vmem:[#allocation2 + $0x40] sm:$0xff] %v2640_v0 }
  0x67   : > { %277 = vst [vmem:[#allocation2 + $0xc8] sm:$0xff] %v2640_v0 }
  0x68   : > { %278 = vst [vmem:[#allocation2 + $0xe0] sm:$0xff] %v2640_v0 }
  0x69   : > { %279 = vst [vmem:[#allocation2 + $0x90] sm:$0xff] %v2640_v0 }
  0x6a   : > { %280 = vst [vmem:[#allocation2 + $0x70] sm:$0xff] %v2640_v0 }
  0x6b   : > { %281 = vst [vmem:[#allocation2 + $0xc0] sm:$0xff] %v2640_v0 }
  0x6c   : > { %282 = vst [vmem:[#allocation2 + $0xa8] sm:$0xff] %v2640_v0 }
  0x6d   : > { %283 = vst [vmem:[#allocation2 + $0xd0] sm:$0xff] %v2640_v0 }
  0x6e   : > { %284 = vst [vmem:[#allocation2 + $0x10] sm:$0xff] %v2640_v0 }
  0x6f   : > { %285 = vst [vmem:[#allocation2 + $0x28] sm:$0xff] %v2640_v0 }
  0x70   : > { %286 = vst [vmem:[#allocation2 + $0xa0] sm:$0xff] %v2640_v0 }
  0x71   : > { %287 = vst [vmem:[#allocation2 + $0xf8] sm:$0xff] %v2640_v0 }
  0x72   : > { %288 = vst [vmem:[#allocation2 + $0x20] sm:$0xff] %v2640_v0 }
  0x73   : > { %289 = vst [vmem:[#allocation2 + $0x98] sm:$0xff] %v2640_v0 }
  0x74   : > { %291 = vst.msk [vmem:[#allocation3] sm:$0xff] %vm290_vm0, %v2640_v0 }
  0x75   : > { %292 = vst.msk [vmem:[#allocation3 + $0x8] sm:$0xff] %vm290_vm0, %v2640_v0 }
  0x76   : > { %293 = vst.msk [vmem:[#allocation3 + $0x10] sm:$0xff] %vm290_vm0, %v2640_v0 }
  0x77   : > { %294 = vst.msk [vmem:[#allocation3 + $0x18] sm:$0xff] %vm290_vm0, %v2640_v0 }
  0x78   : > { %295 = vst.msk [vmem:[#allocation3 + $0x20] sm:$0xff] %vm290_vm0, %v2640_v0 }
  0x79   : > { %296 = vst.msk [vmem:[#allocation3 + $0x28] sm:$0xff] %vm290_vm0, %v2640_v0 }
  0x7a   : > { %297 = vst.msk [vmem:[#allocation3 + $0x30] sm:$0xff] %vm290_vm0, %v2640_v0 }
  0x7b   : > { %298 = vst.msk [vmem:[#allocation3 + $0x38] sm:$0xff] %vm290_vm0, %v2640_v0 }
  0x7c   : > { %299 = vst.msk [vmem:[#allocation3 + $0x40] sm:$0xff] %vm290_vm0, %v2640_v0 }
  0x7d   : > { %300 = vst.msk [vmem:[#allocation3 + $0x48] sm:$0xff] %vm290_vm0, %v2640_v0 }
  0x7e   : > { %301 = vst.msk [vmem:[#allocation3 + $0x50] sm:$0xff] %vm290_vm0, %v2640_v0 }
  0x7f   : > { %302 = vst.msk [vmem:[#allocation3 + $0x58] sm:$0xff] %vm290_vm0, %v2640_v0 }
  0x80   : > { %303 = vst.msk [vmem:[#allocation3 + $0x60] sm:$0xff] %vm290_vm0, %v2640_v0 }
  0x81   : > { %304 = vst.msk [vmem:[#allocation3 + $0x68] sm:$0xff] %vm290_vm0, %v2640_v0 }
  0x82   : > { %305 = vst.msk [vmem:[#allocation3 + $0x70] sm:$0xff] %vm290_vm0, %v2640_v0 }
  0x83   : > { %306 = vst.msk [vmem:[#allocation3 + $0x78] sm:$0xff] %vm290_vm0, %v2640_v0 }
  0x84   : > { %307 = vst.msk [vmem:[#allocation3 + $0x80] sm:$0xff] %vm290_vm0, %v2640_v0 }
  0x85   : > { %308 = vst.msk [vmem:[#allocation3 + $0x88] sm:$0xff] %vm290_vm0, %v2640_v0 }
  0x86   : > { %309 = vst.msk [vmem:[#allocation3 + $0x90] sm:$0xff] %vm290_vm0, %v2640_v0 }
  0x87   : > { %310 = vst.msk [vmem:[#allocation3 + $0x98] sm:$0xff] %vm290_vm0, %v2640_v0 }
  0x88   : > { %311 = vst.msk [vmem:[#allocation3 + $0xa0] sm:$0xff] %vm290_vm0, %v2640_v0 }
  0x89   : > { %312 = vst.msk [vmem:[#allocation3 + $0xa8] sm:$0xff] %vm290_vm0, %v2640_v0 }
  0x8a   : > { %313 = vst.msk [vmem:[#allocation3 + $0xb0] sm:$0xff] %vm290_vm0, %v2640_v0 }
  0x8b   : > { %314 = vst.msk [vmem:[#allocation3 + $0xb8] sm:$0xff] %vm290_vm0, %v2640_v0 }
  0x8c   : > { %315 = vst.msk [vmem:[#allocation3 + $0xc0] sm:$0xff] %vm290_vm0, %v2640_v0 }
  0x8d   : > { %316 = vst.msk [vmem:[#allocation3 + $0xc8] sm:$0xff] %vm290_vm0, %v2640_v0 }
  0x8e   : > { %317 = vst.msk [vmem:[#allocation3 + $0xd0] sm:$0xff] %vm290_vm0, %v2640_v0 }
  0x8f   : > { %318 = vst.msk [vmem:[#allocation3 + $0xd8] sm:$0xff] %vm290_vm0, %v2640_v0 }
  0x90   : > { %319 = vst.msk [vmem:[#allocation3 + $0xe0] sm:$0xff] %vm290_vm0, %v2640_v0 }
  0x91   : > { %320 = vst.msk [vmem:[#allocation3 + $0xe8] sm:$0xff] %vm290_vm0, %v2640_v0 }
  0x92   : > { %321 = vst.msk [vmem:[#allocation3 + $0xf0] sm:$0xff] %vm290_vm0, %v2640_v0 }
  0x93   : > { %322 = vst.msk [vmem:[#allocation3 + $0xf8] sm:$0xff] %vm290_vm0, %v2640_v0 }
  0x94 PF: > { %v2188_v1 = vld [vmem:[%s2846_s2 + $0x38] sm:$0xff]  ;;  %v2187_v3 = vld [vmem:[%s2846_s2 + $0x30] sm:$0xff]  ;;  %v2186_v5 = vld [vmem:[%s2846_s2 + $0x28] sm:$0xff]  ;;  %vm723_vm1 = vcmask 7168   ;;  %s3746_s29 = sld [smem:[#allocation16_spill]] }
  0x95   : > { %v2196_v2 = vld [vmem:[%s2846_s2 + $0x78] sm:$0xff]  ;;  %916 = vmatpush.bf16.msra.mxu0 %v2188_v1  ;;  %2198 = vmatpush.bf16.msra.mxu2 %v2188_v1  ;;  %v2195_v4 = vld [vmem:[%s2846_s2 + $0x70] sm:$0xff]  ;;  %v2194_v6 = vld [vmem:[%s2846_s2 + $0x68] sm:$0xff] }
  0x96   : > { %1005 = vmatpush.bf16.msra.mxu1 %v2196_v2  ;;  %2206 = vmatpush.bf16.msra.mxu3 %v2196_v2  ;;  %v2185_v7 = vld [vmem:[%s2846_s2 + $0x20] sm:$0xff]  ;;  %v2184_v9 = vld [vmem:[%s2846_s2 + $0x18] sm:$0xff]  ;;  %v2183_v11 = vld [vmem:[%s2846_s2 + $0x10] sm:$0xff] }
  0x97   : > { %v2193_v8 = vld [vmem:[%s2846_s2 + $0x60] sm:$0xff]  ;;  %v2192_v10 = vld [vmem:[%s2846_s2 + $0x58] sm:$0xff]  ;;  %v2191_v14 = vld [vmem:[%s2846_s2 + $0x50] sm:$0xff] }
  0x98   : > { %v323_v12 = vld [vmem:[%s2853_s9] sm:$0xff]  ;;  %v324_v15 = vld [vmem:[%s2853_s9 + $0x8] sm:$0xff]  ;;  %v325_v61 = vld [vmem:[%s2853_s9 + $0x10] sm:$0xff] }
  0x99   : > { %917 = vmatpush.bf16.msra.mxu0 %v2187_v3  ;;  %2199 = vmatpush.bf16.msra.mxu2 %v2187_v3  ;;  %v331_v13 = vld [vmem:[%s2853_s9 + $0x40] sm:$0xff]  ;;  %v332_v16 = vld [vmem:[%s2853_s9 + $0x48] sm:$0xff]  ;;  %v339_v17 = vunpack.c.0.s8 %v323_v12  ;;  %v341_v18 = vunpack.c.1.s8 %v323_v12  ;;  %v340_v22 = vunpack.c.0.s8 %v324_v15  ;;  %v342_v23 = vunpack.c.1.s8 %v324_v15  ;;  %v3007_v62 = vld [vmem:[%s2853_s9 + $0x50] sm:$0xff] }
  0x9a   : > { %1006 = vmatpush.bf16.msra.mxu1 %v2195_v4  ;;  %2207 = vmatpush.bf16.msra.mxu3 %v2195_v4  ;;  %v371_v19 = vunpack.c.0.s8 %v331_v13  ;;  %v373_v20 = vunpack.c.1.s8 %v331_v13  ;;  %v2182_v21 = vld [vmem:[%s2846_s2 + $0x8] sm:$0xff]  ;;  %v372_v24 = vunpack.c.0.s8 %v332_v16  ;;  %v374_v25 = vunpack.c.1.s8 %v332_v16  ;;  %v2181_v31 = vld [vmem:[%s2846_s2] sm:$0xff]  ;;  %v326_v3 = vld [vmem:[%s2853_s9 + $0x18] sm:$0xff]  ;;  %p2173_p13 = scmp.ne.s32.totalorder %s3746_s29, 1 }
  0x9b   : > { %v2190_v26 = vld [vmem:[%s2846_s2 + $0x48] sm:$0xff]  ;;  %v403_v27 = vcvt.s32.f32 %v339_v17  ;;  %v405_v28 = vcvt.s32.f32 %v341_v18  ;;  %v404_v32 = vcvt.s32.f32 %v340_v22  ;;  %v406_v33 = vcvt.s32.f32 %v342_v23  ;;  %v2189_v36 = vld [vmem:[%s2846_s2 + $0x40] sm:$0xff]  ;;  %v3015_v4 = vld [vmem:[%s2853_s9 + $0x58] sm:$0xff]  ;;  %s3747_s15 = sld [smem:[#allocation23_spill]] (!%p2173_p13) }
  0x9c   : > { %v435_v29 = vcvt.s32.f32 %v371_v19  ;;  %v437_v30 = vcvt.s32.f32 %v373_v20  ;;  %v436_v34 = vcvt.s32.f32 %v372_v24  ;;  %v438_v35 = vcvt.s32.f32 %v374_v25 }
  0x9d   : > { %918 = vmatpush.bf16.msra.mxu0 %v2186_v5  ;;  %2200 = vmatpush.bf16.msra.mxu2 %v2186_v5  ;;  %v2981_v37 = vpack.c.bf16 %v405_v28, %v403_v27  ;;  %v2985_v39 = vpack.c.bf16 %v406_v33, %v404_v32  ;;  %v343_v41 = vunpack.c.2.s8 %v323_v12  ;;  %v345_v42 = vunpack.c.3.s8 %v323_v12 }
  0x9e   : > { %1007 = vmatpush.bf16.msra.mxu1 %v2194_v6  ;;  %2208 = vmatpush.bf16.msra.mxu3 %v2194_v6  ;;  %v2983_v38 = vpack.c.bf16 %v437_v30, %v435_v29  ;;  %v2987_v40 = vpack.c.bf16 %v438_v35, %v436_v34  ;;  %v375_v43 = vunpack.c.2.s8 %v331_v13  ;;  %v377_v44 = vunpack.c.3.s8 %v331_v13 }
  0x9f   : > { %v344_v45 = vunpack.c.2.s8 %v324_v15  ;;  %v346_v46 = vunpack.c.3.s8 %v324_v15  ;;  %v376_v47 = vunpack.c.2.s8 %v332_v16  ;;  %v378_v48 = vunpack.c.3.s8 %v332_v16 }
  0xa0   : > { %v407_v49 = vcvt.s32.f32 %v343_v41  ;;  %v409_v50 = vcvt.s32.f32 %v345_v42  ;;  %v439_v51 = vcvt.s32.f32 %v375_v43  ;;  %v441_v52 = vcvt.s32.f32 %v377_v44  ;;  %v327_v41 = vld [vmem:[%s2853_s9 + $0x20] sm:$0xff] }
  0xa1   : > { %919 = vmatpush.bf16.msra.mxu0 %v2185_v7  ;;  %2201 = vmatpush.bf16.msra.mxu2 %v2185_v7  ;;  %v408_v53 = vcvt.s32.f32 %v344_v45  ;;  %v410_v54 = vcvt.s32.f32 %v346_v46  ;;  %v440_v55 = vcvt.s32.f32 %v376_v47  ;;  %v442_v56 = vcvt.s32.f32 %v378_v48  ;;  %s3748_s11 = smov (!%p2173_p13), %s3747_s15 }
  0xa2   : > { %1008 = vmatpush.bf16.msra.mxu1 %v2193_v8  ;;  %2209 = vmatpush.bf16.msra.mxu3 %v2193_v8  ;;  %v2993_v57 = vpack.c.bf16 %v409_v50, %v407_v49  ;;  %v2995_v58 = vpack.c.bf16 %v441_v52, %v439_v51  ;;  %v531_v1 = vunpack.c.l.bf16 %v2981_v37  ;;  %v532_v2 = vunpack.c.l.bf16 %v2985_v39  ;;  %v328_v50 = vld [vmem:[%s2853_s9 + $0x28] sm:$0xff] }
  0xa3   : > { %v2997_v59 = vpack.c.bf16 %v410_v54, %v408_v53  ;;  %v2999_v60 = vpack.c.bf16 %v442_v56, %v440_v55  ;;  %v347_v7 = vunpack.c.0.s8 %v325_v61  ;;  %v349_v8 = vunpack.c.1.s8 %v325_v61 }
  0xa4   : > { %v535_v63 = vunpack.c.l.bf16 %v2993_v57  ;;  %v595_v6 = vadd.f32 %v532_v2, %v531_v1  ;;  %v350_v12 = vunpack.c.1.s8 %v326_v3  ;;  %v380_v13 = vunpack.c.0.s8 %v3015_v4 }
  0xa5   : > { %920 = vmatpush.bf16.msra.mxu0 %v2184_v9  ;;  %2202 = vmatpush.bf16.msra.mxu2 %v2184_v9  ;;  %v536_v0 = vunpack.c.l.bf16 %v2997_v59  ;;  %v379_v9 = vunpack.c.0.s8 %v3007_v62  ;;  %v351_v15 = vunpack.c.2.s8 %v325_v61  ;;  %v353_v16 = vunpack.c.3.s8 %v325_v61 }
  0xa6   : > { %1009 = vmatpush.bf16.msra.mxu1 %v2192_v10  ;;  %2210 = vmatpush.bf16.msra.mxu3 %v2192_v10  ;;  %v381_v10 = vunpack.c.1.s8 %v3007_v62  ;;  %v411_v17 = vcvt.s32.f32 %v347_v7  ;;  %v413_v18 = vcvt.s32.f32 %v349_v8  ;;  %v414_v22 = vcvt.s32.f32 %v350_v12 }
  0xa7   : > { %v601_v5 = vadd.f32 %v536_v0, %v535_v63  ;;  %596 = vadd.xlane.f32.xlu0 %v595_v6  ;;  %v443_v19 = vcvt.s32.f32 %v379_v9  ;;  %v444_v23 = vcvt.s32.f32 %v380_v13  ;;  %v352_v25 = vunpack.c.2.s8 %v326_v3 }
  0xa8   : > { %v445_v20 = vcvt.s32.f32 %v381_v10  ;;  %v415_v27 = vcvt.s32.f32 %v351_v15  ;;  %v417_v28 = vcvt.s32.f32 %v353_v16  ;;  %v471_v29 = vpack.c.bf16 %v413_v18, %v411_v17 }
  0xa9   : > { %921 = vmatpush.bf16.msra.mxu0 %v2183_v11  ;;  %2203 = vmatpush.bf16.msra.mxu2 %v2183_v11  ;;  %v348_v11 = vunpack.c.0.s8 %v326_v3  ;;  %v416_v33 = vcvt.s32.f32 %v352_v25  ;;  %v385_v44 = vunpack.c.3.s8 %v3007_v62  ;;  %v537_v45 = vunpack.c.h.bf16 %v2993_v57 }
  0xaa   : > { %1010 = vmatpush.bf16.msra.mxu1 %v2191_v14  ;;  %2211 = vmatpush.bf16.msra.mxu3 %v2191_v14  ;;  %v382_v14 = vunpack.c.1.s8 %v3015_v4  ;;  %v3021_v30 = vpack.c.bf16 %v445_v20, %v443_v19  ;;  %v3025_v35 = vpack.c.bf16 %v417_v28, %v415_v27  ;;  %v539_v42 = vunpack.c.l.bf16 %v471_v29  ;;  %v3054_v27 = vld [vmem:[%s2853_s9 + $0x60] sm:$0xff] }
  0xab   : > { %602 = vadd.xlane.f32.xlu1 %v601_v5  ;;  %v538_v46 = vunpack.c.h.bf16 %v2997_v59  ;;  %v533_v47 = vunpack.c.h.bf16 %v2981_v37  ;;  %v384_v48 = vunpack.c.2.s8 %v3015_v4  ;;  %v386_v49 = vunpack.c.3.s8 %v3015_v4 }
  0xac   : > { %v446_v24 = vcvt.s32.f32 %v382_v14  ;;  %v534_v52 = vunpack.c.h.bf16 %v2985_v39  ;;  %v355_v54 = vunpack.c.0.s8 %v327_v41  ;;  %v357_v55 = vunpack.c.1.s8 %v327_v41 }
  0xad   : > { %922 = vmatpush.bf16.msra.mxu0 %v2182_v21  ;;  %2204 = vmatpush.bf16.msra.mxu2 %v2182_v21  ;;  %v412_v21 = vcvt.s32.f32 %v348_v11  ;;  %v604_v56 = vadd.f32 %v538_v46, %v537_v45  ;;  %v545_v63 = vunpack.c.h.bf16 %v3025_v35  ;;  %v361_v1 = vunpack.c.3.s8 %v327_v41  ;;  %v3070_v45 = vld [vmem:[%s2853_s9 + $0x68] sm:$0xff] }
  0xae   : > { %1011 = vmatpush.bf16.msra.mxu1 %v2190_v26  ;;  %2212 = vmatpush.bf16.msra.mxu3 %v2190_v26  ;;  %v354_v26 = vunpack.c.3.s8 %v326_v3  ;;  %v3023_v32 = vpack.c.bf16 %v446_v24, %v444_v23  ;;  %v358_v2 = vunpack.c.1.s8 %v328_v50  ;;  %v543_v3 = vunpack.c.l.bf16 %v3025_v35 }
  0xaf   : > { %v449_v5 = vcvt.s32.f32 %v385_v44  ;;  %v448_v6 = vcvt.s32.f32 %v384_v48  ;;  %v450_v7 = vcvt.s32.f32 %v386_v49  ;;  %v425_v10 = vcvt.s32.f32 %v361_v1 }
  0xb0   : > { %v418_v34 = vcvt.s32.f32 %v354_v26  ;;  %v419_v11 = vcvt.s32.f32 %v355_v54  ;;  %v421_v12 = vcvt.s32.f32 %v357_v55  ;;  %v422_v15 = vcvt.s32.f32 %v358_v2 }
  0xb1   : > { %923 = vmatpush.bf16.msra.mxu0 %v2181_v31  ;;  %2205 = vmatpush.bf16.msra.mxu2 %v2181_v31  ;;  %v472_v31 = vpack.c.bf16 %v414_v22, %v412_v21  ;;  %v360_v17 = vunpack.c.2.s8 %v328_v50  ;;  %v362_v18 = vunpack.c.3.s8 %v328_v50  ;;  %v3045_v23 = vpack.c.bf16 %v450_v7, %v448_v6 }
  0xb2   : > { %1012 = vmatpush.bf16.msra.mxu1 %v2189_v36  ;;  %2213 = vmatpush.bf16.msra.mxu3 %v2189_v36  ;;  %v383_v36 = vunpack.c.2.s8 %v3007_v62  ;;  %v474_v53 = vpack.c.bf16 %v418_v34, %v416_v33  ;;  %v356_v62 = vunpack.c.0.s8 %v328_v50  ;;  %v3047_v24 = vpack.c.bf16 %v421_v12, %v419_v11 }
  0xb3   : > { %v540_v43 = vunpack.c.l.bf16 %v472_v31  ;;  %v542_v61 = vunpack.c.h.bf16 %v472_v31  ;;  %605 = vadd.xlane.f32.xlu1 %v604_v56  ;;  %v424_v20 = vcvt.s32.f32 %v360_v17  ;;  %v426_v21 = vcvt.s32.f32 %v362_v18 }
  0xb4   : > { %924 = vmatmul.bf16.vlgmr.msra.gmra.mxu0 %v2981_v37  ;;  %964 = vmatmul.bf16.vlgmr.msra.gmra.mxu2 %v2983_v38  ;;  %v359_v37 = vunpack.c.2.s8 %v327_v41  ;;  %v546_v0 = vunpack.c.h.bf16 %v474_v53  ;;  %v447_v4 = vcvt.s32.f32 %v383_v36  ;;  %v420_v13 = vcvt.s32.f32 %v356_v62  ;;  %v329_v41 = vld [vmem:[%s2853_s9 + $0x30] sm:$0xff] }
  0xb5   : > { %1013 = vmatmul.bf16.vlgmr.msra.gmra.mxu1 %v2985_v39  ;;  %1053 = vmatmul.bf16.vlgmr.msra.gmra.mxu3 %v2987_v40  ;;  %v607_v51 = vadd.f32 %v540_v43, %v539_v42  ;;  %v544_v39 = vunpack.c.l.bf16 %v474_v53  ;;  %v3051_v26 = vpack.c.bf16 %v426_v21, %v424_v20  ;;  %v547_v28 = vunpack.c.l.bf16 %v3047_v24  ;;  %v330_v42 = vld [vmem:[%s2853_s9 + $0x38] sm:$0xff] }
  0xb6   : > { %v423_v9 = vcvt.s32.f32 %v359_v37  ;;  %v616_v14 = vadd.f32 %v546_v0, %v545_v63  ;;  %v3043_v22 = vpack.c.bf16 %v449_v5, %v447_v4  ;;  %v3049_v25 = vpack.c.bf16 %v422_v15, %v420_v13 }
  0xb7   : > { %608 = vadd.xlane.f32.xlu2 %v607_v51  ;;  %v613_v16 = vadd.f32 %v544_v39, %v543_v3  ;;  %v552_v33 = vunpack.c.l.bf16 %v3051_v26  ;;  %v549_v34 = vunpack.c.h.bf16 %v3047_v24  ;;  %v387_v43 = vunpack.c.0.s8 %v3054_v27 }
  0xb8   : > { %v3041_v19 = vpack.c.bf16 %v425_v10, %v423_v9  ;;  %v550_v36 = vunpack.c.h.bf16 %v3049_v25  ;;  %v389_v44 = vunpack.c.1.s8 %v3054_v27  ;;  %v363_v46 = vunpack.c.0.s8 %v329_v41 }
  0xb9   : > { %v364_v49 = vunpack.c.0.s8 %v330_v42  ;;  %v365_v50 = vunpack.c.1.s8 %v329_v41  ;;  %v388_v55 = vunpack.c.0.s8 %v3070_v45  ;;  %v390_v56 = vunpack.c.1.s8 %v3070_v45 }
  0xba   : > { %v622_v48 = vadd.f32 %v550_v36, %v549_v34  ;;  %v553_v51 = vunpack.c.h.bf16 %v3041_v19  ;;  %v427_v54 = vcvt.s32.f32 %v363_v46  ;;  %v451_v62 = vcvt.s32.f32 %v387_v43 }
  0xbb   : > { %617 = vadd.xlane.f32.xlu1 %v616_v14  ;;  %v453_v63 = vcvt.s32.f32 %v389_v44  ;;  %v452_v2 = vcvt.s32.f32 %v388_v55  ;;  %v454_v3 = vcvt.s32.f32 %v390_v56  ;;  %v367_v7 = vunpack.c.2.s8 %v329_v41 }
  0xbc   : > { %v369_v9 = vunpack.c.3.s8 %v329_v41  ;;  %v370_v10 = vunpack.c.3.s8 %v330_v42  ;;  %v393_v44 = vunpack.c.3.s8 %v3054_v27  ;;  %v565_v46 = vunpack.c.h.bf16 %v2983_v38 }
  0xbd   : > { %v3084_v13 = vpack.c.bf16 %v453_v63, %v451_v62  ;;  %v431_v14 = vcvt.s32.f32 %v367_v7  ;;  %v574_v62 = vunpack.c.h.bf16 %v3023_v32  ;;  %v337_v63 = vld [vmem:[%s2853_s9 + $0x70] sm:$0xff]  ;;  %v577_v7 = vunpack.c.h.bf16 %v3043_v22 }
  0xbe   : > { %v433_v17 = vcvt.s32.f32 %v369_v9  ;;  %v434_v18 = vcvt.s32.f32 %v370_v10 }
  0xc0   : > { %v3088_v20 = vpack.c.bf16 %v433_v17, %v431_v14 }
  0xc2   : > { %v561_v34 = vunpack.c.h.bf16 %v3088_v20 }
  0xc4   : > { %929 = vmatmul.bf16.gmra.mxu0 %v2993_v57  ;;  %969 = vmatmul.bf16.gmra.mxu2 %v2995_v58  ;;  %v598_v57 = vadd.f32 %v534_v52, %v533_v47  ;;  %v554_v52 = vunpack.c.h.bf16 %v3051_v26 }
  0xc5   : > { %1018 = vmatmul.bf16.gmra.mxu1 %v2997_v59  ;;  %1058 = vmatmul.bf16.gmra.mxu3 %v2999_v60  ;;  %v541_v59 = vunpack.c.h.bf16 %v471_v29 }
  0xc6   : > { %599 = vadd.xlane.f32.xlu0 %v598_v57  ;;  %v428_v57 = vcvt.s32.f32 %v364_v49  ;;  %v628_v0 = vadd.f32 %v554_v52, %v553_v51  ;;  %v570_v49 = vunpack.c.h.bf16 %v2999_v60  ;;  %v568_v51 = vunpack.c.l.bf16 %v2999_v60 }
  0xc7   : > { %v610_v8 = vadd.f32 %v542_v61, %v541_v59  ;;  %v429_v59 = vcvt.s32.f32 %v365_v50  ;;  %v567_v50 = vunpack.c.l.bf16 %v2995_v58  ;;  %v457_v52 = vcvt.s32.f32 %v393_v44 }
  0xc8   : > { %v572_v60 = vunpack.c.l.bf16 %v3023_v32 }
  0xc9   : > { %611 = vadd.xlane.f32.xlu2 %v610_v8  ;;  %v3076_v37 = vpack.c.bf16 %v429_v59, %v427_v54  ;;  %v368_v8 = vunpack.c.2.s8 %v330_v42  ;;  %v649_v56 = vadd.f32 %v568_v51, %v567_v50  ;;  %v576_v59 = vunpack.c.l.bf16 %v3045_v23 }
  0xcb   : > { %v557_v39 = vunpack.c.h.bf16 %v3076_v37  ;;  %v555_v4 = vunpack.c.l.bf16 %v3076_v37  ;;  %v432_v15 = vcvt.s32.f32 %v368_v8  ;;  %v579_v8 = vunpack.c.l.bf16 %v3084_v13 }
  0xcd   : > { %v3090_v21 = vpack.c.bf16 %v434_v18, %v432_v15 }
  0xce   : > { %614 = vadd.xlane.f32.xlu0 %v613_v16  ;;  %v3086_v16 = vpack.c.bf16 %v454_v3, %v452_v2 }
  0xcf   : > { %v562_v36 = vunpack.c.h.bf16 %v3090_v21 }
  0xd0   : > { %v580_v9 = vunpack.c.l.bf16 %v3086_v16 }
  0xd1   : > { %v640_v43 = vadd.f32 %v562_v36, %v561_v34 }
  0xd2   : > { %v667_v18 = vadd.f32 %v580_v9, %v579_v8 }
  0xd4   : > { %934 = vmatmul.bf16.gmra.mxu0 %v471_v29  ;;  %974 = vmatmul.bf16.gmra.mxu2 %v3021_v30  ;;  %v548_v29 = vunpack.c.l.bf16 %v3049_v25 }
  0xd5   : > { %1023 = vmatmul.bf16.gmra.mxu1 %v472_v31  ;;  %1063 = vmatmul.bf16.gmra.mxu3 %v3023_v32  ;;  %v551_v31 = vunpack.c.l.bf16 %v3041_v19  ;;  %v581_v32 = vunpack.c.h.bf16 %v3084_v13 }
  0xd6   : > { %623 = vadd.xlane.f32.xlu0 %v622_v48  ;;  %v569_v48 = vunpack.c.h.bf16 %v2995_v58  ;;  %v571_v58 = vunpack.c.l.bf16 %v3021_v30 }
  0xd7   : > { %v625_v47 = vadd.f32 %v552_v33, %v551_v31  ;;  %v559_v31 = vunpack.c.l.bf16 %v3088_v20  ;;  %v560_v33 = vunpack.c.l.bf16 %v3090_v21 }
  0xd8   : > { %v652_v55 = vadd.f32 %v570_v49, %v569_v48  ;;  %v655_v2 = vadd.f32 %v572_v60, %v571_v58 }
  0xd9   : > { %626 = vadd.xlane.f32.xlu1 %v625_v47  ;;  %v566_v47 = vunpack.c.h.bf16 %v2987_v40 }
  0xe4   : > { %939 = vmatmul.bf16.gmra.mxu0 %v3025_v35  ;;  %979 = vmatmul.bf16.gmra.mxu2 %v3043_v22  ;;  %v619_v35 = vadd.f32 %v548_v29, %v547_v28  ;;  %v563_v28 = vunpack.c.l.bf16 %v2983_v38  ;;  %v564_v29 = vunpack.c.l.bf16 %v2987_v40 }
  0xe5   : > { %1028 = vmatmul.bf16.gmra.mxu1 %v474_v53  ;;  %1068 = vmatmul.bf16.gmra.mxu3 %v3045_v23  ;;  %v366_v53 = vunpack.c.1.s8 %v330_v42  ;;  %v637_v42 = vadd.f32 %v560_v33, %v559_v31 }
  0xe6   : > { %620 = vadd.xlane.f32.xlu2 %v619_v35  ;;  %v643_v41 = vadd.f32 %v564_v29, %v563_v28  ;;  %v392_v35 = vunpack.c.2.s8 %v3070_v45  ;;  %v401_v29 = vunpack.c.3.s8 %v337_v63 }
  0xe7   : > { %v430_v61 = vcvt.s32.f32 %v366_v53 }
  0xe8   : > { %v456_v53 = vcvt.s32.f32 %v392_v35 }
  0xe9   : > { %v3078_v1 = vpack.c.bf16 %v430_v61, %v428_v57  ;;  %v575_v57 = vunpack.c.l.bf16 %v3043_v22  ;;  %v573_v61 = vunpack.c.h.bf16 %v3021_v30  ;;  %v578_v30 = vunpack.c.h.bf16 %v3045_v23 }
  0xea   : > { %v399_v22 = vunpack.c.2.s8 %v337_v63 }
  0xeb   : > { %v558_v5 = vunpack.c.h.bf16 %v3078_v1  ;;  %v556_v6 = vunpack.c.l.bf16 %v3078_v1  ;;  %v661_v3 = vadd.f32 %v576_v59, %v575_v57  ;;  %v664_v15 = vadd.f32 %v578_v30, %v577_v7  ;;  %v772_v57 = vld [vmem:[#allocation2 + $0x38] sm:$0xff]  ;;  %v501_v30 = vld [vmem:[#allocation3 + $0x10] sm:$0xff] }
  0xed   : > { %v634_v11 = vadd.f32 %v558_v5, %v557_v39  ;;  %v631_v12 = vadd.f32 %v556_v6, %v555_v4  ;;  %v658_v39 = vadd.f32 %v574_v62, %v573_v61  ;;  %v397_v4 = vunpack.c.1.s8 %v337_v63 }
  0xee   : > { %629 = vadd.xlane.f32.xlu2 %v628_v0  ;;  %v338_v0 = vld [vmem:[%s2853_s9 + $0x78] sm:$0xff] }
  0xef   : > { %635 = vadd.xlane.f32.xlu1 %v634_v11  ;;  %632 = vadd.xlane.f32.xlu0 %v631_v12  ;;  %v396_v5 = vunpack.c.0.s8 %v338_v0  ;;  %v398_v6 = vunpack.c.1.s8 %v338_v0  ;;  %v461_v11 = vcvt.s32.f32 %v397_v4  ;;  %v400_v31 = vunpack.c.2.s8 %v338_v0 }
  0xf0   : > { %v402_v33 = vunpack.c.3.s8 %v338_v0 }
  0xf1   : > { %v460_v12 = vcvt.s32.f32 %v396_v5  ;;  %v462_v14 = vcvt.s32.f32 %v398_v6  ;;  %v464_v44 = vcvt.s32.f32 %v400_v31  ;;  %v758_v6 = vld [vmem:[#allocation2 + $0xd8] sm:$0xff]  ;;  %v503_v31 = vld [vmem:[#allocation3 + $0x20] sm:$0xff] }
  0xf2   : > { %v466_v35 = vcvt.s32.f32 %v402_v33 }
  0xf3   : > { %v496_v23 = vpack.c.bf16 %v462_v14, %v460_v12 }
  0xf4   : > { %944 = vmatmul.bf16.gmra.mxu0 %v3047_v24  ;;  %984 = vmatmul.bf16.gmra.mxu2 %v3084_v13  ;;  %v391_v24 = vunpack.c.2.s8 %v3054_v27  ;;  %v498_v49 = vpack.c.bf16 %v466_v35, %v464_v44 }
  0xf5   : > { %1033 = vmatmul.bf16.gmra.mxu1 %v3049_v25  ;;  %1073 = vmatmul.bf16.gmra.mxu3 %v3086_v16  ;;  %v394_v25 = vunpack.c.3.s8 %v3070_v45  ;;  %v646_v45 = vadd.f32 %v566_v47, %v565_v46  ;;  %v588_v36 = vunpack.c.l.bf16 %v496_v23  ;;  %v590_v50 = vunpack.c.h.bf16 %v496_v23 }
  0xf6   : > { %638 = vadd.xlane.f32.xlu2 %v637_v42  ;;  %v455_v27 = vcvt.s32.f32 %v391_v24  ;;  %v465_v42 = vcvt.s32.f32 %v401_v29  ;;  %v759_v29 = vld [vmem:[#allocation2 + $0x18] sm:$0xff] }
  0xf7   : > { %644 = vadd.xlane.f32.xlu1 %v643_v41  ;;  %641 = vadd.xlane.f32.xlu0 %v640_v43  ;;  %v458_v54 = vcvt.s32.f32 %v394_v25  ;;  %v463_v41 = vcvt.s32.f32 %v399_v22 }
  0xf8   : > { %v3112_v38 = vpack.c.bf16 %v457_v52, %v455_v27  ;;  %v594_v27 = vunpack.c.h.bf16 %v498_v49 }
  0xf9   : > { %v3114_v40 = vpack.c.bf16 %v458_v54, %v456_v53  ;;  %v497_v48 = vpack.c.bf16 %v465_v42, %v463_v41  ;;  %v592_v53 = vunpack.c.l.bf16 %v498_v49 }
  0xfa   : > { %v583_v13 = vunpack.c.l.bf16 %v3112_v38  ;;  %v585_v43 = vunpack.c.h.bf16 %v3112_v38 }
  0xfb   : > { %v586_v24 = vunpack.c.h.bf16 %v3114_v40  ;;  %v593_v51 = vunpack.c.h.bf16 %v497_v48  ;;  %v591_v52 = vunpack.c.l.bf16 %v497_v48 }
  0xfd   : > { %v676_v47 = vadd.f32 %v586_v24, %v585_v43 }
  0xfe   : > { %647 = vadd.xlane.f32.xlu2 %v646_v45  ;;  %v688_v45 = vadd.f32 %v594_v27, %v593_v51  ;;  %v504_v51 = vld [vmem:[#allocation3 + $0x28] sm:$0xff] }
  0xff   : > { %653 = vadd.xlane.f32.xlu1 %v652_v55  ;;  %650 = vadd.xlane.f32.xlu0 %v649_v56  ;;  %v756_v56 = vld [vmem:[#allocation2 + $0xb0] sm:$0xff] }
 0x104   : > { %949 = vmatmul.bf16.gmra.mxu0 %v3041_v19  ;;  %989 = vmatmul.bf16.gmra.mxu2 %v3112_v38  ;;  %v395_v19 = vunpack.c.0.s8 %v337_v63  ;;  %v757_v63 = vld [vmem:[#allocation2] sm:$0xff] }
 0x105   : > { %1038 = vmatmul.bf16.gmra.mxu1 %v3051_v26  ;;  %1078 = vmatmul.bf16.gmra.mxu3 %v3114_v40  ;;  %v582_v26 = vunpack.c.h.bf16 %v3086_v16  ;;  %v584_v16 = vunpack.c.l.bf16 %v3114_v40 }
 0x106   : > { %656 = vadd.xlane.f32.xlu2 %v655_v2  ;;  %v459_v10 = vcvt.s32.f32 %v395_v19 }
 0x107   : > { %662 = vadd.xlane.f32.xlu1 %v661_v3  ;;  %659 = vadd.xlane.f32.xlu0 %v658_v39  ;;  %v670_v17 = vadd.f32 %v582_v26, %v581_v32  ;;  %v673_v25 = vadd.f32 %v584_v16, %v583_v13  ;;  %v773_v39 = vld [vmem:[#allocation2 + $0x58] sm:$0xff]  ;;  %v499_v26 = vld [vmem:[#allocation3] sm:$0xff]  ;;  %v500_v16 = vld [vmem:[#allocation3 + $0x8] sm:$0xff] }
 0x108   : > { %v495_v28 = vpack.c.bf16 %v461_v11, %v459_v10  ;;  %v502_v13 = vld [vmem:[#allocation3 + $0x18] sm:$0xff] }
 0x10a   : > { %v587_v34 = vunpack.c.l.bf16 %v495_v28 }
 0x10c   : > { %v679_v46 = vadd.f32 %v588_v36, %v587_v34 }
 0x10e   : > { %665 = vadd.xlane.f32.xlu2 %v664_v15 }
 0x10f   : > { %671 = vadd.xlane.f32.xlu1 %v670_v17  ;;  %668 = vadd.xlane.f32.xlu0 %v667_v18  ;;  %v774_v17 = vld [vmem:[#allocation2 + $0x40] sm:$0xff] }
 0x114   : > { %954 = vmatmul.bf16.gmra.mxu0 %v3076_v37  ;;  %994 = vmatmul.bf16.gmra.mxu2 %v495_v28  ;;  %v589_v37 = vunpack.c.h.bf16 %v495_v28 }
 0x115   : > { %1043 = vmatmul.bf16.gmra.mxu1 %v3078_v1  ;;  %1083 = vmatmul.bf16.gmra.mxu3 %v496_v23  ;;  %v685_v1 = vadd.f32 %v592_v53, %v591_v52  ;;  %v506_v52 = vld [vmem:[#allocation3 + $0x38] sm:$0xff]  ;;  %v505_v53 = vld [vmem:[#allocation3 + $0x30] sm:$0xff] }
 0x116   : > { %674 = vadd.xlane.f32.xlu2 %v673_v25  ;;  %v682_v54 = vadd.f32 %v590_v50, %v589_v37  ;;  %v760_v37 = vld [vmem:[#allocation2 + $0x50] sm:$0xff] }
 0x117   : > { %680 = vadd.xlane.f32.xlu1 %v679_v46  ;;  %677 = vadd.xlane.f32.xlu0 %v676_v47  ;;  %v775_v46 = vld [vmem:[#allocation2 + $0xc8] sm:$0xff] }
 0x11a   : > { %v597_v11 = vpop.xlane.xlu0 %596 }
 0x11b   : > { %v691_v12 = vadd.f32 %v597_v11, %v499_v26  ;;  %v762_v11 = vld [vmem:[#allocation2 + $0x30] sm:$0xff] }
 0x11d   : > { %724 = vst.msk [vmem:[#allocation3] sm:$0xff] %vm723_vm1, %v691_v12 }
 0x11e   : > { %683 = vadd.xlane.f32.xlu2 %v682_v54  ;;  %v603_v32 = vpop.xlane.xlu1 %602 }
 0x11f   : > { %689 = vadd.xlane.f32.xlu1 %v688_v45  ;;  %686 = vadd.xlane.f32.xlu0 %v685_v1  ;;  %v693_v10 = vadd.f32 %v603_v32, %v501_v30 }
 0x121   : > { %726 = vst.msk [vmem:[#allocation3 + $0x10] sm:$0xff] %vm723_vm1, %v693_v10 }
 0x124   : > { %959 = vmatmul.bf16.gmra.mxu0 %v3088_v20  ;;  %999 = vmatmul.bf16.gmra.mxu2 %v497_v48 }
 0x125   : > { %1048 = vmatmul.bf16.gmra.mxu1 %v3090_v21  ;;  %1088 = vmatmul.bf16.gmra.mxu3 %v498_v49 }
 0x126   : > { %v606_v42 = vpop.xlane.xlu1 %605 }
 0x127   : > { %v694_v43 = vadd.f32 %v606_v42, %v502_v13 }
 0x129   : > { %727 = vst.msk [vmem:[#allocation3 + $0x18] sm:$0xff] %vm723_vm1, %v694_v43 }
 0x12a   : > { %v609_v33 = vpop.xlane.xlu2 %608 }
 0x12b   : > { %v695_v41 = vadd.f32 %v609_v33, %v503_v31 }
 0x12d   : > { %728 = vst.msk [vmem:[#allocation3 + $0x20] sm:$0xff] %vm723_vm1, %v695_v41  ;;  %v778_v41 = vld [vmem:[#allocation2 + $0x70] sm:$0xff] }
 0x131   : > { %v925_v55 = vpop.f32.mrf.mxu0 }
 0x132   : > { %v1014_v38 = vpop.f32.mrf.mxu1 }
 0x133   : > { %v1015_v40 = vadd.f32 %v1014_v38, %v925_v55  ;;  %v618_v55 = vpop.xlane.xlu1 %617 }
 0x135   : > { %v1094_v58 = vadd.f32 %v1015_v40, %v756_v56  ;;  %v698_v56 = vadd.f32 %v618_v55, %v506_v52 }
 0x137   : > { %1126 = vst [vmem:[#allocation2 + $0xb0] sm:$0xff] %v1094_v58  ;;  %v965_v60 = vpop.f32.mrf.mxu2 }
 0x138   : > { %v1054_v59 = vpop.f32.mrf.mxu3  ;;  %731 = vst.msk [vmem:[#allocation3 + $0x38] sm:$0xff] %vm723_vm1, %v698_v56 }
 0x139   : > { %v1055_v61 = vadd.f32 %v1054_v59, %v965_v60  ;;  %v927_v62 = vpop.f32.mrf.mxu0  ;;  %v600_v24 = vpop.xlane.xlu0 %599 }
 0x13a   : > { %v1016_v0 = vpop.f32.mrf.mxu1  ;;  %v692_v35 = vadd.f32 %v600_v24, %v500_v16 }
 0x13b   : > { %v1110_v2 = vadd.f32 %v1055_v61, %v772_v57  ;;  %v1017_v3 = vadd.f32 %v1016_v0, %v927_v62  ;;  %v776_v57 = vld [vmem:[#allocation2 + $0xe0] sm:$0xff] }
 0x13c   : > { %725 = vst.msk [vmem:[#allocation3 + $0x8] sm:$0xff] %vm723_vm1, %v692_v35  ;;  %v612_v27 = vpop.xlane.xlu2 %611  ;;  %v763_v35 = vld [vmem:[#allocation2 + $0x48] sm:$0xff] }
 0x13d   : > { %1142 = vst [vmem:[#allocation2 + $0x38] sm:$0xff] %v1110_v2  ;;  %v1095_v20 = vadd.f32 %v1017_v3, %v757_v63  ;;  %v696_v1 = vadd.f32 %v612_v27, %v504_v51  ;;  %v761_v63 = vld [vmem:[#allocation2 + $0x68] sm:$0xff]  ;;  %v507_v2 = vld [vmem:[#allocation3 + $0x40] sm:$0xff] }
 0x13f   : > { %1127 = vst [vmem:[#allocation2] sm:$0xff] %v1095_v20  ;;  %v967_v21 = vpop.f32.mrf.mxu2  ;;  %v509_v20 = vld [vmem:[#allocation3 + $0x50] sm:$0xff] }
 0x140   : > { %v1056_v19 = vpop.f32.mrf.mxu3  ;;  %729 = vst.msk [vmem:[#allocation3 + $0x28] sm:$0xff] %vm723_vm1, %v696_v1  ;;  %v779_v1 = vld [vmem:[#allocation2 + $0xc0] sm:$0xff] }
 0x141   : > { %v1057_v4 = vadd.f32 %v1056_v19, %v967_v21  ;;  %v930_v5 = vpop.f32.mrf.mxu0  ;;  %v615_v38 = vpop.xlane.xlu0 %614  ;;  %v508_v21 = vld [vmem:[#allocation3 + $0x48] sm:$0xff] }
 0x142   : > { %v1019_v7 = vpop.f32.mrf.mxu1  ;;  %v697_v58 = vadd.f32 %v615_v38, %v505_v53 }
 0x143   : > { %v1111_v8 = vadd.f32 %v1057_v4, %v773_v39  ;;  %v1020_v9 = vadd.f32 %v1019_v7, %v930_v5 }
 0x144   : > { %730 = vst.msk [vmem:[#allocation3 + $0x30] sm:$0xff] %vm723_vm1, %v697_v58  ;;  %v764_v58 = vld [vmem:[#allocation2 + $0x80] sm:$0xff] }
 0x145   : > { %1143 = vst [vmem:[#allocation2 + $0x58] sm:$0xff] %v1111_v8  ;;  %v1096_v14 = vadd.f32 %v1020_v9, %v758_v6  ;;  %v777_v8 = vld [vmem:[#allocation2 + $0x90] sm:$0xff] }
 0x147   : > { %1128 = vst [vmem:[#allocation2 + $0xd8] sm:$0xff] %v1096_v14  ;;  %v970_v15 = vpop.f32.mrf.mxu2 }
 0x148   : > { %v1059_v18 = vpop.f32.mrf.mxu3 }
 0x149   : > { %v1060_v28 = vadd.f32 %v1059_v18, %v970_v15  ;;  %v932_v22 = vpop.f32.mrf.mxu0  ;;  %v624_v7 = vpop.xlane.xlu0 %623  ;;  %v510_v15 = vld [vmem:[#allocation3 + $0x58] sm:$0xff]  ;;  %v512_v18 = vld [vmem:[#allocation3 + $0x68] sm:$0xff] }
 0x14a   : > { %v1021_v23 = vpop.f32.mrf.mxu1  ;;  %v700_v32 = vadd.f32 %v624_v7, %v508_v21 }
 0x14b   : > { %v1112_v34 = vadd.f32 %v1060_v28, %v774_v17  ;;  %v1022_v36 = vadd.f32 %v1021_v23, %v932_v22  ;;  %v511_v28 = vld [vmem:[#allocation3 + $0x60] sm:$0xff] }
 0x14c   : > { %v627_v5 = vpop.xlane.xlu1 %626  ;;  %733 = vst.msk [vmem:[#allocation3 + $0x48] sm:$0xff] %vm723_vm1, %v700_v32  ;;  %v765_v32 = vld [vmem:[#allocation2 + $0x88] sm:$0xff] }
 0x14d   : > { %1144 = vst [vmem:[#allocation2 + $0x40] sm:$0xff] %v1112_v34  ;;  %v1097_v44 = vadd.f32 %v1022_v36, %v759_v29  ;;  %v701_v6 = vadd.f32 %v627_v5, %v509_v20 }
 0x14f   : > { %1129 = vst [vmem:[#allocation2 + $0x18] sm:$0xff] %v1097_v44  ;;  %v972_v25 = vpop.f32.mrf.mxu2 }
 0x150   : > { %v1061_v47 = vpop.f32.mrf.mxu3  ;;  %734 = vst.msk [vmem:[#allocation3 + $0x50] sm:$0xff] %vm723_vm1, %v701_v6 }
 0x151   : > { %v1062_v48 = vadd.f32 %v1061_v47, %v972_v25  ;;  %v935_v49 = vpop.f32.mrf.mxu0  ;;  %v513_v25 = vld [vmem:[#allocation3 + $0x70] sm:$0xff] }
 0x152   : > { %v1024_v50 = vpop.f32.mrf.mxu1 }
 0x153   : > { %v1113_v54 = vadd.f32 %v1062_v48, %v775_v46  ;;  %v1025_v45 = vadd.f32 %v1024_v50, %v935_v49  ;;  %v515_v46 = vld [vmem:[#allocation3 + $0x80] sm:$0xff]  ;;  %v514_v49 = vld [vmem:[#allocation3 + $0x78] sm:$0xff] }
 0x155   : > { %1145 = vst [vmem:[#allocation2 + $0xc8] sm:$0xff] %v1113_v54  ;;  %v1098_v40 = vadd.f32 %v1025_v45, %v760_v37 }
 0x157   : > { %1130 = vst [vmem:[#allocation2 + $0x50] sm:$0xff] %v1098_v40  ;;  %v975_v60 = vpop.f32.mrf.mxu2 }
 0x158   : > { %v1064_v59 = vpop.f32.mrf.mxu3 }
 0x159   : > { %v1065_v61 = vadd.f32 %v1064_v59, %v975_v60  ;;  %v937_v62 = vpop.f32.mrf.mxu0  ;;  %v621_v3 = vpop.xlane.xlu2 %620  ;;  %v516_v60 = vld [vmem:[#allocation3 + $0x88] sm:$0xff] }
 0x15a   : > { %v1026_v0 = vpop.f32.mrf.mxu1  ;;  %v699_v4 = vadd.f32 %v621_v3, %v507_v2 }
 0x15b   : > { %v1114_v39 = vadd.f32 %v1065_v61, %v776_v57  ;;  %v1027_v19 = vadd.f32 %v1026_v0, %v937_v62  ;;  %v518_v57 = vld [vmem:[#allocation3 + $0x98] sm:$0xff]  ;;  %v517_v62 = vld [vmem:[#allocation3 + $0x90] sm:$0xff] }
 0x15c   : > { %732 = vst.msk [vmem:[#allocation3 + $0x40] sm:$0xff] %vm723_vm1, %v699_v4  ;;  %v780_v4 = vld [vmem:[#allocation2 + $0xa8] sm:$0xff] }
 0x15d   : > { %1146 = vst [vmem:[#allocation2 + $0xe0] sm:$0xff] %v1114_v39  ;;  %v1099_v30 = vadd.f32 %v1027_v19, %v761_v63 }
 0x15f   : > { %1131 = vst [vmem:[#allocation2 + $0x68] sm:$0xff] %v1099_v30  ;;  %v977_v26 = vpop.f32.mrf.mxu2 }
 0x160   : > { %v1066_v9 = vpop.f32.mrf.mxu3 }
 0x161   : > { %v1067_v10 = vadd.f32 %v1066_v9, %v977_v26  ;;  %v940_v12 = vpop.f32.mrf.mxu0  ;;  %v630_v17 = vpop.xlane.xlu2 %629  ;;  %v519_v26 = vld [vmem:[#allocation3 + $0xa0] sm:$0xff] }
 0x162   : > { %v1029_v14 = vpop.f32.mrf.mxu1  ;;  %v702_v23 = vadd.f32 %v630_v17, %v510_v15  ;;  %v636_v31 = vpop.xlane.xlu1 %635 }
 0x163   : > { %v1115_v22 = vadd.f32 %v1067_v10, %v777_v8  ;;  %v1030_v29 = vadd.f32 %v1029_v14, %v940_v12  ;;  %v633_v33 = vpop.xlane.xlu0 %632  ;;  %v704_v16 = vadd.f32 %v636_v31, %v512_v18  ;;  %v521_v8 = vld [vmem:[#allocation3 + $0xb0] sm:$0xff] }
 0x164   : > { %v703_v34 = vadd.f32 %v633_v33, %v511_v28  ;;  %735 = vst.msk [vmem:[#allocation3 + $0x58] sm:$0xff] %vm723_vm1, %v702_v23  ;;  %v781_v23 = vld [vmem:[#allocation2 + $0xd0] sm:$0xff] }
 0x165   : > { %1147 = vst [vmem:[#allocation2 + $0x90] sm:$0xff] %v1115_v22  ;;  %v1100_v13 = vadd.f32 %v1030_v29, %v762_v11  ;;  %v520_v11 = vld [vmem:[#allocation3 + $0xa8] sm:$0xff] }
 0x166   : > { %737 = vst.msk [vmem:[#allocation3 + $0x68] sm:$0xff] %vm723_vm1, %v704_v16 }
 0x167   : > { %1132 = vst [vmem:[#allocation2 + $0x30] sm:$0xff] %v1100_v13  ;;  %v980_v36 = vpop.f32.mrf.mxu2 }
 0x168   : > { %v1069_v42 = vpop.f32.mrf.mxu3  ;;  %736 = vst.msk [vmem:[#allocation3 + $0x60] sm:$0xff] %vm723_vm1, %v703_v34  ;;  %v766_v34 = vld [vmem:[#allocation2 + $0xe8] sm:$0xff] }
 0x169   : > { %v1070_v43 = vadd.f32 %v1069_v42, %v980_v36  ;;  %v942_v24 = vpop.f32.mrf.mxu0  ;;  %v639_v37 = vpop.xlane.xlu2 %638  ;;  %v522_v36 = vld [vmem:[#allocation3 + $0xb8] sm:$0xff] }
 0x16a   : > { %v1031_v44 = vpop.f32.mrf.mxu1  ;;  %v645_v50 = vpop.xlane.xlu1 %644  ;;  %v705_v27 = vadd.f32 %v639_v37, %v513_v25 }
 0x16b   : > { %v1116_v47 = vadd.f32 %v1070_v43, %v778_v41  ;;  %v1032_v48 = vadd.f32 %v1031_v44, %v942_v24  ;;  %v707_v52 = vadd.f32 %v645_v50, %v515_v46  ;;  %v642_v53 = vpop.xlane.xlu0 %641  ;;  %v524_v41 = vld [vmem:[#allocation3 + $0xc8] sm:$0xff]  ;;  %v523_v24 = vld [vmem:[#allocation3 + $0xc0] sm:$0xff]  ;;  %v782_v50 = vld [vmem:[#allocation2 + $0x10] sm:$0xff] }
 0x16c   : > { %v706_v54 = vadd.f32 %v642_v53, %v514_v49  ;;  %738 = vst.msk [vmem:[#allocation3 + $0x70] sm:$0xff] %vm723_vm1, %v705_v27 }
 0x16d   : > { %1148 = vst [vmem:[#allocation2 + $0x70] sm:$0xff] %v1116_v47  ;;  %v1101_v51 = vadd.f32 %v1032_v48, %v763_v35 }
 0x16e   : > { %740 = vst.msk [vmem:[#allocation3 + $0x80] sm:$0xff] %vm723_vm1, %v707_v52 }
 0x16f   : > { %1133 = vst [vmem:[#allocation2 + $0x48] sm:$0xff] %v1101_v51  ;;  %v982_v45 = vpop.f32.mrf.mxu2 }
 0x170   : > { %v1071_v55 = vpop.f32.mrf.mxu3  ;;  %739 = vst.msk [vmem:[#allocation3 + $0x78] sm:$0xff] %vm723_vm1, %v706_v54  ;;  %v767_v54 = vld [vmem:[#allocation2 + $0xb8] sm:$0xff] }
 0x171   : > { %v1072_v56 = vadd.f32 %v1071_v55, %v982_v45  ;;  %v945_v38 = vpop.f32.mrf.mxu0  ;;  %v648_v63 = vpop.xlane.xlu2 %647  ;;  %v525_v45 = vld [vmem:[#allocation3 + $0xd0] sm:$0xff] }
 0x172   : > { %v1034_v40 = vpop.f32.mrf.mxu1  ;;  %v654_v0 = vpop.xlane.xlu1 %653  ;;  %v708_v3 = vadd.f32 %v648_v63, %v516_v60 }
 0x173   : > { %v1117_v59 = vadd.f32 %v1072_v56, %v779_v1  ;;  %v1035_v61 = vadd.f32 %v1034_v40, %v945_v38  ;;  %v710_v20 = vadd.f32 %v654_v0, %v518_v57  ;;  %v651_v21 = vpop.xlane.xlu0 %650  ;;  %v527_v1 = vld [vmem:[#allocation3 + $0xe0] sm:$0xff]  ;;  %v526_v38 = vld [vmem:[#allocation3 + $0xd8] sm:$0xff]  ;;  %v783_v0 = vld [vmem:[#allocation2 + $0x28] sm:$0xff] }
 0x174   : > { %v709_v39 = vadd.f32 %v651_v21, %v517_v62  ;;  %741 = vst.msk [vmem:[#allocation3 + $0x88] sm:$0xff] %vm723_vm1, %v708_v3 }
 0x175   : > { %1149 = vst [vmem:[#allocation2 + $0xc0] sm:$0xff] %v1117_v59  ;;  %v1102_v2 = vadd.f32 %v1035_v61, %v764_v58 }
 0x176   : > { %743 = vst.msk [vmem:[#allocation3 + $0x98] sm:$0xff] %vm723_vm1, %v710_v20 }
 0x177   : > { %1134 = vst [vmem:[#allocation2 + $0x80] sm:$0xff] %v1102_v2  ;;  %v985_v19 = vpop.f32.mrf.mxu2 }
 0x178   : > { %v1074_v5 = vpop.f32.mrf.mxu3  ;;  %742 = vst.msk [vmem:[#allocation3 + $0x90] sm:$0xff] %vm723_vm1, %v709_v39  ;;  %v768_v39 = vld [vmem:[#allocation2 + $0x60] sm:$0xff] }
 0x179   : > { %v1075_v6 = vadd.f32 %v1074_v5, %v985_v19  ;;  %v947_v7 = vpop.f32.mrf.mxu0  ;;  %v657_v12 = vpop.xlane.xlu2 %656  ;;  %v528_v19 = vld [vmem:[#allocation3 + $0xe8] sm:$0xff] }
 0x17a   : > { %v1036_v30 = vpop.f32.mrf.mxu1  ;;  %v663_v14 = vpop.xlane.xlu1 %662  ;;  %v711_v17 = vadd.f32 %v657_v12, %v519_v26 }
 0x17b   : > { %v1118_v9 = vadd.f32 %v1075_v6, %v780_v4  ;;  %v1037_v10 = vadd.f32 %v1036_v30, %v947_v7  ;;  %v713_v18 = vadd.f32 %v663_v14, %v521_v8  ;;  %v660_v28 = vpop.xlane.xlu0 %659  ;;  %v530_v4 = vld [vmem:[#allocation3 + $0xf8] sm:$0xff]  ;;  %v529_v7 = vld [vmem:[#allocation3 + $0xf0] sm:$0xff]  ;;  %v784_v14 = vld [vmem:[#allocation2 + $0xa0] sm:$0xff] }
 0x17c   : > { %v712_v22 = vadd.f32 %v660_v28, %v520_v11  ;;  %744 = vst.msk [vmem:[#allocation3 + $0xa0] sm:$0xff] %vm723_vm1, %v711_v17 }
 0x17d   : > { %1150 = vst [vmem:[#allocation2 + $0xa8] sm:$0xff] %v1118_v9  ;;  %v1103_v15 = vadd.f32 %v1037_v10, %v765_v32 }
 0x17e   : > { %746 = vst.msk [vmem:[#allocation3 + $0xb0] sm:$0xff] %vm723_vm1, %v713_v18 }
 0x17f   : > { %1135 = vst [vmem:[#allocation2 + $0x88] sm:$0xff] %v1103_v15  ;;  %v987_v29 = vpop.f32.mrf.mxu2 }
 0x180   : > { %v1076_v31 = vpop.f32.mrf.mxu3  ;;  %745 = vst.msk [vmem:[#allocation3 + $0xa8] sm:$0xff] %vm723_vm1, %v712_v22  ;;  %v769_v22 = vld [vmem:[#allocation2 + $0xf0] sm:$0xff] }
 0x181   : > { %v1077_v33 = vadd.f32 %v1076_v31, %v987_v29  ;;  %v950_v13 = vpop.f32.mrf.mxu0  ;;  %v666_v44 = vpop.xlane.xlu2 %665 }
 0x182   : > { %v1039_v16 = vpop.f32.mrf.mxu1  ;;  %v672_v35 = vpop.xlane.xlu1 %671  ;;  %v714_v46 = vadd.f32 %v666_v44, %v522_v36 }
 0x183   : > { %v1119_v42 = vadd.f32 %v1077_v33, %v781_v23  ;;  %v1040_v43 = vadd.f32 %v1039_v16, %v950_v13  ;;  %v716_v47 = vadd.f32 %v672_v35, %v524_v41  ;;  %v669_v48 = vpop.xlane.xlu0 %668  ;;  %v785_v13 = vld [vmem:[#allocation2 + $0xf8] sm:$0xff] }
 0x184   : > { %v715_v49 = vadd.f32 %v669_v48, %v523_v24  ;;  %747 = vst.msk [vmem:[#allocation3 + $0xb8] sm:$0xff] %vm723_vm1, %v714_v46 }
 0x185   : > { %1151 = vst [vmem:[#allocation2 + $0xd0] sm:$0xff] %v1119_v42  ;;  %v1104_v25 = vadd.f32 %v1040_v43, %v766_v34  ;;  %v770_v42 = vld [vmem:[#allocation2 + $0x8] sm:$0xff] }
 0x186   : > { %749 = vst.msk [vmem:[#allocation3 + $0xc8] sm:$0xff] %vm723_vm1, %v716_v47 }
 0x187   : > { %1136 = vst [vmem:[#allocation2 + $0xe8] sm:$0xff] %v1104_v25  ;;  %v990_v37 = vpop.f32.mrf.mxu2  ;;  %v786_v25 = vld [vmem:[#allocation2 + $0x20] sm:$0xff] }
 0x188   : > { %v1079_v51 = vpop.f32.mrf.mxu3  ;;  %748 = vst.msk [vmem:[#allocation3 + $0xc0] sm:$0xff] %vm723_vm1, %v715_v49 }
 0x189   : > { %v1080_v27 = vadd.f32 %v1079_v51, %v990_v37  ;;  %v952_v52 = vpop.f32.mrf.mxu0  ;;  %v675_v40 = vpop.xlane.xlu2 %674  ;;  %v771_v37 = vld [vmem:[#allocation2 + $0x78] sm:$0xff] }
 0x18a   : > { %v1041_v53 = vpop.f32.mrf.mxu1  ;;  %v681_v58 = vpop.xlane.xlu1 %680  ;;  %v717_v57 = vadd.f32 %v675_v40, %v525_v45 }
 0x18b   : > { %v1120_v55 = vadd.f32 %v1080_v27, %v782_v50  ;;  %v1042_v56 = vadd.f32 %v1041_v53, %v952_v52  ;;  %v719_v59 = vadd.f32 %v681_v58, %v527_v1  ;;  %v678_v61 = vpop.xlane.xlu0 %677  ;;  %v787_v53 = vld [vmem:[#allocation2 + $0x98] sm:$0xff] }
 0x18c   : > { %v718_v62 = vadd.f32 %v678_v61, %v526_v38  ;;  %750 = vst.msk [vmem:[#allocation3 + $0xd0] sm:$0xff] %vm723_vm1, %v717_v57 }
 0x18d   : > { %1152 = vst [vmem:[#allocation2 + $0x10] sm:$0xff] %v1120_v55  ;;  %v1105_v60 = vadd.f32 %v1042_v56, %v767_v54 }
 0x18e   : > { %752 = vst.msk [vmem:[#allocation3 + $0xe0] sm:$0xff] %vm723_vm1, %v719_v59 }
 0x18f   : > { %1137 = vst [vmem:[#allocation2 + $0xb8] sm:$0xff] %v1105_v60  ;;  %v992_v63 = vpop.f32.mrf.mxu2 }
 0x190   : > { %v1081_v2 = vpop.f32.mrf.mxu3  ;;  %751 = vst.msk [vmem:[#allocation3 + $0xd8] sm:$0xff] %vm723_vm1, %v718_v62 }
 0x191   : > { %v1082_v3 = vadd.f32 %v1081_v2, %v992_v63  ;;  %v955_v20 = vpop.f32.mrf.mxu0  ;;  %v684_v30 = vpop.xlane.xlu2 %683 }
 0x192   : > { %v1044_v21 = vpop.f32.mrf.mxu1  ;;  %v690_v32 = vpop.xlane.xlu1 %689  ;;  %v720_v8 = vadd.f32 %v684_v30, %v528_v19 }
 0x193   : > { %v1121_v5 = vadd.f32 %v1082_v3, %v783_v0  ;;  %v1045_v6 = vadd.f32 %v1044_v21, %v955_v20  ;;  %v722_v9 = vadd.f32 %v690_v32, %v530_v4  ;;  %v687_v10 = vpop.xlane.xlu0 %686 }
 0x194   : > { %v721_v11 = vadd.f32 %v687_v10, %v529_v7  ;;  %753 = vst.msk [vmem:[#allocation3 + $0xe8] sm:$0xff] %vm723_vm1, %v720_v8 }
 0x195   : > { %1153 = vst [vmem:[#allocation2 + $0x28] sm:$0xff] %v1121_v5  ;;  %v1106_v26 = vadd.f32 %v1045_v6, %v768_v39 }
 0x196   : > { %755 = vst.msk [vmem:[#allocation3 + $0xf8] sm:$0xff] %vm723_vm1, %v722_v9 }
 0x197   : > { %1138 = vst [vmem:[#allocation2 + $0x60] sm:$0xff] %v1106_v26  ;;  %v995_v12 = vpop.f32.mrf.mxu2 }
 0x198   : > { %v1084_v15 = vpop.f32.mrf.mxu3  ;;  %754 = vst.msk [vmem:[#allocation3 + $0xf0] sm:$0xff] %vm723_vm1, %v721_v11 }
 0x199   : > { %v1085_v17 = vadd.f32 %v1084_v15, %v995_v12  ;;  %v957_v18 = vpop.f32.mrf.mxu0 }
 0x19a   : > { %v1046_v28 = vpop.f32.mrf.mxu1 }
 0x19b   : > { %v1122_v29 = vadd.f32 %v1085_v17, %v784_v14  ;;  %v1047_v23 = vadd.f32 %v1046_v28, %v957_v18 }
 0x19d   : > { %1154 = vst [vmem:[#allocation2 + $0xa0] sm:$0xff] %v1122_v29  ;;  %v1107_v31 = vadd.f32 %v1047_v23, %v769_v22 }
 0x19f   : > { %1139 = vst [vmem:[#allocation2 + $0xf0] sm:$0xff] %v1107_v31  ;;  %v997_v33 = vpop.f32.mrf.mxu2 }
 0x1a0   : > { %v1086_v16 = vpop.f32.mrf.mxu3 }
 0x1a1   : > { %v1087_v34 = vadd.f32 %v1086_v16, %v997_v33  ;;  %v960_v36 = vpop.f32.mrf.mxu0 }
 0x1a2   : > { %v1049_v41 = vpop.f32.mrf.mxu1 }
 0x1a3   : > { %v1123_v43 = vadd.f32 %v1087_v34, %v785_v13  ;;  %v1050_v24 = vadd.f32 %v1049_v41, %v960_v36 }
 0x1a5   : > { %1155 = vst [vmem:[#allocation2 + $0xf8] sm:$0xff] %v1123_v43  ;;  %v1108_v44 = vadd.f32 %v1050_v24, %v770_v42 }
 0x1a7   : > { %1140 = vst [vmem:[#allocation2 + $0x8] sm:$0xff] %v1108_v44  ;;  %v1000_v35 = vpop.f32.mrf.mxu2 }
 0x1a8   : > { %v1089_v46 = vpop.f32.mrf.mxu3 }
 0x1a9   : > { %v1090_v47 = vadd.f32 %v1089_v46, %v1000_v35  ;;  %v962_v48 = vpop.f32.mrf.mxu0 }
 0x1aa   : > { %v1051_v49 = vpop.f32.mrf.mxu1 }
 0x1ab   : > { %v1124_v50 = vadd.f32 %v1090_v47, %v786_v25  ;;  %v1052_v51 = vadd.f32 %v1051_v49, %v962_v48 }
 0x1ad   : > { %1156 = vst [vmem:[#allocation2 + $0x20] sm:$0xff] %v1124_v50  ;;  %v1109_v27 = vadd.f32 %v1052_v51, %v771_v37 }
 0x1af   : > { %1141 = vst [vmem:[#allocation2 + $0x78] sm:$0xff] %v1109_v27  ;;  %v1002_v52 = vpop.f32.mrf.mxu2 }
 0x1b0   : > { %v1091_v54 = vpop.f32.mrf.mxu3 }
 0x1b1   : > { %v1092_v45 = vadd.f32 %v1091_v54, %v1002_v52  ;;  %1161 = sbr.rel (%p2173_p13) target bundleno = 683 (0x2ab), region = 48 }
 0x1b3   : > { %v1125_v1 = vadd.f32 %v1092_v45, %v787_v53 }
 0x1b5   : > { %1157 = vst [vmem:[#allocation2 + $0x98] sm:$0xff] %v1125_v1 }
 0x1b6   : > { %v1198_v55 = vld [vmem:[#allocation3 + $0x20] sm:$0xff]  ;;  %v1196_v56 = vld [vmem:[#allocation3 + $0x10] sm:$0xff]  ;;  %v2641_v40 = vmov 0   ;;  %v1199_v58 = vld [vmem:[#allocation3 + $0x28] sm:$0xff] }
 0x1b7   : > { %v1194_v38 = vld [vmem:[#allocation3] sm:$0xff]  ;;  %2356 = vset.pattern.permute.xlu2 %v2641_v40  ;;  %2355 = vset.pattern.permute.xlu1 %v2641_v40  ;;  %v1197_v60 = vld [vmem:[#allocation3 + $0x18] sm:$0xff]  ;;  %v1195_v57 = vld [vmem:[#allocation3 + $0x8] sm:$0xff] }
 0x1b8   : > { %2354 = vset.pattern.permute.xlu0 %v2641_v40  ;;  %1248 = vperm.xlu2 %2356, %v1198_v55   ;;  %v1202_v59 = vld [vmem:[#allocation3 + $0x40] sm:$0xff]  ;;  %v1201_v61 = vld [vmem:[#allocation3 + $0x38] sm:$0xff]  ;;  %v1200_v62 = vld [vmem:[#allocation3 + $0x30] sm:$0xff] }
 0x1b9   : > { %1238 = vperm.xlu1 %2355, %v1196_v56   ;;  %1228 = vperm.xlu0 %2354, %v1194_v38   ;;  %v1205_v63 = vld [vmem:[#allocation3 + $0x58] sm:$0xff]  ;;  %v1204_v0 = vld [vmem:[#allocation3 + $0x50] sm:$0xff]  ;;  %v1203_v2 = vld [vmem:[#allocation3 + $0x48] sm:$0xff] }
 0x1ba   : > { %v1208_v3 = vld [vmem:[#allocation3 + $0x70] sm:$0xff]  ;;  %v1207_v20 = vld [vmem:[#allocation3 + $0x68] sm:$0xff]  ;;  %v1206_v21 = vld [vmem:[#allocation3 + $0x60] sm:$0xff] }
 0x1bb   : > { %v1211_v39 = vld [vmem:[#allocation3 + $0x88] sm:$0xff]  ;;  %v1210_v19 = vld [vmem:[#allocation3 + $0x80] sm:$0xff]  ;;  %v1209_v4 = vld [vmem:[#allocation3 + $0x78] sm:$0xff] }
 0x1bc   : > { %v1214_v5 = vld [vmem:[#allocation3 + $0xa0] sm:$0xff]  ;;  %v1213_v6 = vld [vmem:[#allocation3 + $0x98] sm:$0xff]  ;;  %v1212_v7 = vld [vmem:[#allocation3 + $0x90] sm:$0xff] }
 0x1bd   : > { %v1217_v30 = vld [vmem:[#allocation3 + $0xb8] sm:$0xff]  ;;  %v1216_v32 = vld [vmem:[#allocation3 + $0xb0] sm:$0xff]  ;;  %v1215_v26 = vld [vmem:[#allocation3 + $0xa8] sm:$0xff] }
 0x1be   : > { %v1220_v8 = vld [vmem:[#allocation3 + $0xd0] sm:$0xff]  ;;  %v1219_v9 = vld [vmem:[#allocation3 + $0xc8] sm:$0xff]  ;;  %v1218_v10 = vld [vmem:[#allocation3 + $0xc0] sm:$0xff] }
 0x1bf   : > { %v1223_v11 = vld [vmem:[#allocation3 + $0xe8] sm:$0xff]  ;;  %v1222_v12 = vld [vmem:[#allocation3 + $0xe0] sm:$0xff]  ;;  %v1221_v14 = vld [vmem:[#allocation3 + $0xd8] sm:$0xff] }
 0x1c0   : > { %1253 = vperm.xlu2 %2356, %v1199_v58   ;;  %v1225_v15 = vld [vmem:[#allocation3 + $0xf8] sm:$0xff]  ;;  %v1224_v17 = vld [vmem:[#allocation3 + $0xf0] sm:$0xff]  ;;  %v3178_v42 = vld [vmem:[%s3747_s15] ss:$0 sm:$0xff] }
 0x1c1   : > { %1243 = vperm.xlu1 %2355, %v1197_v60   ;;  %1233 = vperm.xlu0 %2354, %v1195_v57   ;;  %v1166_v41 = vld [vmem:[#allocation2 + $0x50] sm:$0xff]  ;;  %v1167_v53 = vld [vmem:[#allocation2 + $0x68] sm:$0xff] }
 0x1c8   : > { %1268 = vperm.xlu2 %2356, %v1202_v59  }
 0x1c9   : > { %1263 = vperm.xlu1 %2355, %v1201_v61   ;;  %1258 = vperm.xlu0 %2354, %v1200_v62  }
 0x1d0   : > { %1283 = vperm.xlu2 %2356, %v1205_v63  }
 0x1d1   : > { %1278 = vperm.xlu1 %2355, %v1204_v0   ;;  %1273 = vperm.xlu0 %2354, %v1203_v2  }
 0x1d8   : > { %1298 = vperm.xlu2 %2356, %v1208_v3  }
 0x1d9   : > { %1293 = vperm.xlu1 %2355, %v1207_v20   ;;  %1288 = vperm.xlu0 %2354, %v1206_v21  }
 0x1e0   : > { %1313 = vperm.xlu2 %2356, %v1211_v39  }
 0x1e1   : > { %1308 = vperm.xlu1 %2355, %v1210_v19   ;;  %1303 = vperm.xlu0 %2354, %v1209_v4   ;;  %v1170_v4 = vld [vmem:[#allocation2 + $0x80] sm:$0xff] }
 0x1e8   : > { %1328 = vperm.xlu2 %2356, %v1214_v5  }
 0x1e9   : > { %1323 = vperm.xlu1 %2355, %v1213_v6   ;;  %1318 = vperm.xlu0 %2354, %v1212_v7  }
 0x1f0   : > { %1343 = vperm.xlu2 %2356, %v1217_v30   ;;  %v1176_v30 = vld [vmem:[#allocation2 + $0x8] sm:$0xff] }
 0x1f1   : > { %1338 = vperm.xlu1 %2355, %v1216_v32   ;;  %1333 = vperm.xlu0 %2354, %v1215_v26  }
 0x1f8   : > { %1358 = vperm.xlu2 %2356, %v1220_v8  }
 0x1f9   : > { %1353 = vperm.xlu1 %2355, %v1219_v9   ;;  %1348 = vperm.xlu0 %2354, %v1218_v10  }
 0x200   : > { %1373 = vperm.xlu2 %2356, %v1223_v11  }
 0x201   : > { %1368 = vperm.xlu1 %2355, %v1222_v12   ;;  %1363 = vperm.xlu0 %2354, %v1221_v14  }
 0x209   : > { %1383 = vperm.xlu1 %2355, %v1225_v15   ;;  %1378 = vperm.xlu0 %2354, %v1224_v17  }
 0x212   : > { %v1249_v18 = vpop.permute.xlu2 %1248 }
 0x213   : > { %2358 = vrcp.f32 %v1249_v18  ;;  %v1457_v23 = vand.u32 2147483648, %v1249_v18  ;;  %vm1451_vm2 = vweird.f32 %v1249_v18  ;;  %v1455_v33 = vand.u32 2147483647, %v1249_v18 }
 0x215   : > { %v1458_v16 = vor.u32 1.1754944e-38, %v1457_v23  ;;  %vm1456_vm5 = vcmp.eq.f32.partialorder %v1455_v33, 8.507059e+37 }
 0x219   : > { %v2359_v28 = vpop.eup %2358 }
 0x21a   : > { %v1447_v22 = vmul.f32 %v2359_v28, %v1249_v18  ;;  %v1254_v29 = vpop.permute.xlu2 %1253  ;;  %vm1452_vm3 = vweird.f32 %v2359_v28 }
 0x21b   : > { %2360 = vrcp.f32 %v1254_v29  ;;  %vm1453_vm4 = vmor %vm1451_vm2, %vm1452_vm3  ;;  %vm1466_vm6 = vweird.f32 %v1254_v29  ;;  %v1472_v25 = vand.u32 2147483648, %v1254_v29  ;;  %v1470_v48 = vand.u32 2147483647, %v1254_v29 }
 0x21c   : > { %v1448_v31 = vsub.f32 1.0, %v1447_v22 }
 0x21d   : > { %v1473_v50 = vor.u32 1.1754944e-38, %v1472_v25  ;;  %vm1471_vm9 = vcmp.eq.f32.partialorder %v1470_v48, 8.507059e+37  ;;  %v1173_v25 = vld [vmem:[#allocation2 + $0xb8] sm:$0xff] }
 0x21e   : > { %v1449_v13 = vmul.f32 %v2359_v28, %v1448_v31 }
 0x220   : > { %v1450_v34 = vadd.f32 %v2359_v28, %v1449_v13 }
 0x221   : > { %v2361_v36 = vpop.eup %2360 }
 0x222   : > { %v1454_v43 = vsel %vm1453_vm4, %v2359_v28, %v1450_v34  ;;  %v1462_v24 = vmul.f32 %v2361_v36, %v1254_v29  ;;  %v1269_v44 = vpop.permute.xlu2 %1268  ;;  %vm1467_vm7 = vweird.f32 %v2361_v36 }
 0x223   : > { %v1459_v35 = vsel %vm1456_vm5, %v1458_v16, %v1454_v43  ;;  %2362 = vrcp.f32 %v1269_v44  ;;  %vm1468_vm8 = vmor %vm1466_vm6, %vm1467_vm7  ;;  %vm1511_vm10 = vweird.f32 %v1269_v44  ;;  %v1515_v56 = vand.u32 2147483647, %v1269_v44 }
 0x224   : > { %v1460_v46 = vmul.f32 %v1459_v35, %v1166_v41  ;;  %v1463_v47 = vsub.f32 1.0, %v1462_v24  ;;  %v1517_v38 = vand.u32 2147483648, %v1269_v44 }
 0x225   : > { %vm1516_vm13 = vcmp.eq.f32.partialorder %v1515_v56, 8.507059e+37 }
 0x226   : > { %v1874_v49 = vadd.f32 %v3178_v42, %v1460_v46  ;;  %v1464_v37 = vmul.f32 %v2361_v36, %v1463_v47  ;;  %v1518_v2 = vor.u32 1.1754944e-38, %v1517_v38 }
 0x228   : > { %v1906_v51 = vmax.f32 %v1874_v49, 0.0  ;;  %v1465_v27 = vadd.f32 %v2361_v36, %v1464_v37  ;;  %v1164_v49 = vld [vmem:[#allocation2 + $0xd8] sm:$0xff] }
 0x229   : > { %v2363_v52 = vpop.eup %2362 }
 0x22a   : > { %1938 = vst [vmem:[%s2862_s28 + $0x20] sm:$0xff] %v1906_v51  ;;  %v1469_v54 = vsel %vm1468_vm8, %v2361_v36, %v1465_v27  ;;  %v1507_v45 = vmul.f32 %v2363_v52, %v1269_v44  ;;  %v3182_v1 = vpop.permute.xlu2 %1283  ;;  %vm1512_vm11 = vweird.f32 %v2363_v52 }
 0x22b   : > { %v1474_v55 = vsel %vm1471_vm9, %v1473_v50, %v1469_v54  ;;  %2364 = vrcp.f32 %v3182_v1  ;;  %v3185_v40 = vpop.permute.xlu1 %1238  ;;  %v3187_v58 = vpop.permute.xlu0 %1228  ;;  %v1560_v59 = vand.u32 2147483647, %v3182_v1  ;;  %v1562_v63 = vand.u32 2147483648, %v3182_v1  ;;  %vm3195_vm12 = vmor %vm1511_vm10, %vm1512_vm11 }
 0x22c   : > { %v1475_v60 = vmul.f32 %v1474_v55, %v1167_v53  ;;  %v1508_v57 = vsub.f32 1.0, %v1507_v45  ;;  %2366 = vrcp.f32 %v3185_v40  ;;  %v1425_v3 = vand.u32 2147483647, %v3185_v40  ;;  %v1162_v55 = vld [vmem:[#allocation2 + $0xb0] sm:$0xff] }
 0x22d   : > { %2368 = vrcp.f32 %v3187_v58  ;;  %v1427_v20 = vand.u32 2147483648, %v3185_v40  ;;  %vm1556_vm14 = vweird.f32 %v3182_v1  ;;  %vm3206_vm15 = vcmp.eq.f32.partialorder %v1560_v59, 8.507059e+37 }
 0x22e   : > { %v1875_v61 = vadd.f32 %v3178_v42, %v1475_v60  ;;  %v1509_v62 = vmul.f32 %v2363_v52, %v1508_v57  ;;  %v1563_v32 = vor.u32 1.1754944e-38, %v1562_v63  ;;  %vm1421_vm0 = vweird.f32 %v3185_v40 }
 0x22f   : > { %vm3214_vm1 = vcmp.eq.f32.partialorder %v1425_v3, 8.507059e+37  ;;  %v1428_v11 = vor.u32 1.1754944e-38, %v1427_v20  ;;  %v1395_v18 = vand.u32 2147483647, %v3187_v58  ;;  %v1397_v28 = vand.u32 2147483648, %v3187_v58 }
 0x230   : > { %v1907_v21 = vmax.f32 %v1875_v61, 0.0  ;;  %v1510_v39 = vadd.f32 %v2363_v52, %v1509_v62  ;;  %vm1391_vm3 = vweird.f32 %v3187_v58 }
 0x231   : > { %v2365_v19 = vpop.eup %2364  ;;  %vm3231_vm5 = vcmp.eq.f32.partialorder %v1395_v18, 8.507059e+37  ;;  %v1398_v44 = vor.u32 1.1754944e-38, %v1397_v28  ;;  %v1165_v28 = vld [vmem:[#allocation2 + $0x18] sm:$0xff] }
 0x232   : > { %v2367_v5 = vpop.eup %2366  ;;  %1939 = vst [vmem:[%s2862_s28 + $0x28] sm:$0xff] %v1907_v21  ;;  %v1514_v6 = vsel %vm3195_vm12, %v2363_v52, %v1510_v39  ;;  %v1552_v7 = vmul.f32 %v2365_v19, %v3182_v1  ;;  %v3211_v26 = vpop.permute.xlu2 %1298  ;;  %vm1557_vm2 = vweird.f32 %v2365_v19 }
 0x233   : > { %v1519_v8 = vsel %vm1516_vm13, %v1518_v2, %v1514_v6  ;;  %v1417_v9 = vmul.f32 %v2367_v5, %v3185_v40  ;;  %2370 = vrcp.f32 %v3211_v26  ;;  %v3219_v12 = vpop.permute.xlu1 %1243  ;;  %v2369_v14 = vpop.eup %2368  ;;  %v1605_v33 = vand.u32 2147483647, %v3211_v26  ;;  %vm1558_vm6 = vmor %vm1556_vm14, %vm1557_vm2 }
 0x234   : > { %v1520_v15 = vmul.f32 %v1519_v8, %v1170_v4  ;;  %v1553_v17 = vsub.f32 1.0, %v1552_v7  ;;  %v1387_v29 = vmul.f32 %v2369_v14, %v3187_v58  ;;  %2372 = vrcp.f32 %v3219_v12  ;;  %v3228_v13 = vpop.permute.xlu0 %1233 }
 0x235   : > { %v1418_v22 = vsub.f32 1.0, %v1417_v9  ;;  %vm1422_vm4 = vweird.f32 %v2367_v5  ;;  %v1607_v36 = vand.u32 2147483648, %v3211_v26  ;;  %vm1392_vm7 = vweird.f32 %v2369_v14 }
 0x236   : > { %v1878_v23 = vadd.f32 %v3178_v42, %v1520_v15  ;;  %v1554_v31 = vmul.f32 %v2365_v19, %v1553_v17  ;;  %v1388_v34 = vsub.f32 1.0, %v1387_v29  ;;  %2374 = vrcp.f32 %v3228_v13  ;;  %vm1423_vm8 = vmor %vm1421_vm0, %vm1422_vm4 }
 0x237   : > { %v1419_v16 = vmul.f32 %v2367_v5, %v1418_v22  ;;  %vm1601_vm9 = vweird.f32 %v3211_v26  ;;  %vm3245_vm10 = vcmp.eq.f32.partialorder %v1605_v33, 8.507059e+37  ;;  %v1608_v53 = vor.u32 1.1754944e-38, %v1607_v36  ;;  %vm1393_vm11 = vmor %vm1391_vm3, %vm1392_vm7  ;;  %v1163_v36 = vld [vmem:[#allocation2] sm:$0xff] }
 0x238   : > { %v1910_v41 = vmax.f32 %v1878_v23, 0.0  ;;  %v1555_v43 = vadd.f32 %v2365_v19, %v1554_v31  ;;  %v1389_v47 = vmul.f32 %v2369_v14, %v1388_v34  ;;  %v1442_v38 = vand.u32 2147483648, %v3219_v12 }
 0x239   : > { %v2371_v35 = vpop.eup %2370  ;;  %v1420_v46 = vadd.f32 %v2367_v5, %v1419_v16  ;;  %vm1436_vm12 = vweird.f32 %v3219_v12  ;;  %v1440_v3 = vand.u32 2147483647, %v3219_v12  ;;  %v1410_v10 = vand.u32 2147483647, %v3228_v13 }
 0x23a   : > { %1942 = vst [vmem:[%s2862_s28 + $0x40] sm:$0xff] %v1910_v41  ;;  %v1559_v48 = vsel %vm1558_vm6, %v2365_v19, %v1555_v43  ;;  %v1597_v37 = vmul.f32 %v2371_v35, %v3211_v26  ;;  %v1390_v52 = vadd.f32 %v2369_v14, %v1389_v47  ;;  %v2373_v54 = vpop.eup %2372  ;;  %vm1602_vm13 = vweird.f32 %v2371_v35  ;;  %v3264_v20 = vpop.permute.xlu2 %1313 }
 0x23b   : > { %v1564_v51 = vsel %vm3206_vm15, %v1563_v32, %v1559_v48  ;;  %v1424_v27 = vsel %vm1423_vm8, %v2367_v5, %v1420_v46  ;;  %v1432_v57 = vmul.f32 %v2373_v54, %v3219_v12  ;;  %v3266_v21 = vpop.permute.xlu1 %1263  ;;  %v1443_v4 = vor.u32 1.1754944e-38, %v1442_v38  ;;  %vm1603_vm14 = vmor %vm1601_vm9, %vm1602_vm13 }
 0x23c   : > { %v1565_v45 = vmul.f32 %v1564_v51, %v1173_v25  ;;  %v1429_v1 = vsel %vm3214_vm1, %v1428_v11, %v1424_v27  ;;  %v1598_v56 = vsub.f32 1.0, %v1597_v37  ;;  %v1394_v60 = vsel %vm1393_vm11, %v2369_v14, %v1390_v52  ;;  %v2375_v63 = vpop.eup %2374  ;;  %v3280_v26 = vpop.permute.xlu0 %1258 }
 0x23d   : > { %v1430_v40 = vmul.f32 %v1429_v1, %v1164_v49  ;;  %v1399_v61 = vsel %vm3231_vm5, %v1398_v44, %v1394_v60  ;;  %v1433_v2 = vsub.f32 1.0, %v1432_v57  ;;  %v1402_v5 = vmul.f32 %v2375_v63, %v3228_v13 }
 0x23e   : > { %v1881_v59 = vadd.f32 %v3178_v42, %v1565_v45  ;;  %v1599_v62 = vmul.f32 %v2371_v35, %v1598_v56  ;;  %v1400_v0 = vmul.f32 %v1399_v61, %v1162_v55  ;;  %vm1437_vm15 = vweird.f32 %v2373_v54 }
 0x23f   : > { %v1872_v58 = vadd.f32 %v3178_v42, %v1430_v40  ;;  %v1434_v32 = vmul.f32 %v2373_v54, %v1433_v2  ;;  %v1403_v9 = vsub.f32 1.0, %v1402_v5  ;;  %2376 = vrcp.f32 %v3264_v20  ;;  %vm1438_vm0 = vmor %vm1436_vm12, %vm1437_vm15 }
 0x240   : > { %v1913_v39 = vmax.f32 %v1881_v59, 0.0  ;;  %v1600_v19 = vadd.f32 %v2371_v35, %v1599_v62  ;;  %v1870_v7 = vadd.f32 %v3178_v42, %v1400_v0  ;;  %v1412_v17 = vand.u32 2147483648, %v3228_v13  ;;  %v1179_v62 = vld [vmem:[#allocation2 + $0x58] sm:$0xff] }
 0x241   : > { %v1904_v6 = vmax.f32 %v1872_v58, 0.0  ;;  %v1435_v15 = vadd.f32 %v2373_v54, %v1434_v32  ;;  %v1404_v22 = vmul.f32 %v2375_v63, %v1403_v9  ;;  %vm1407_vm1 = vweird.f32 %v2375_v63 }
 0x242   : > { %1945 = vst [vmem:[%s2862_s28 + $0x58] sm:$0xff] %v1913_v39  ;;  %v1604_v8 = vsel %vm1603_vm14, %v2371_v35, %v1600_v19  ;;  %v1902_v11 = vmax.f32 %v1870_v7, 0.0  ;;  %2378 = vrcp.f32 %v3266_v21  ;;  %vm1441_vm2 = vcmp.eq.f32.partialorder %v1440_v3, 8.507059e+37  ;;  %v3294_v47 = vpop.permute.xlu2 %1328 }
 0x243   : > { %1936 = vst [vmem:[%s2862_s28 + $0x10] sm:$0xff] %v1904_v6  ;;  %v1609_v14 = vsel %vm3245_vm10, %v1608_v53, %v1604_v8  ;;  %v1439_v29 = vsel %vm1438_vm0, %v2373_v54, %v1435_v15  ;;  %vm1406_vm3 = vweird.f32 %v3228_v13  ;;  %v1405_v33 = vadd.f32 %v2375_v63, %v1404_v22  ;;  %v3296_v48 = vpop.permute.xlu1 %1278 }
 0x244   : > { %v1610_v18 = vmul.f32 %v1609_v14, %v1176_v30  ;;  %1934 = vst [vmem:[%s2862_s28] sm:$0xff] %v1902_v11  ;;  %v1444_v31 = vsel %vm1441_vm2, %v1443_v4, %v1439_v29  ;;  %v1650_v16 = vand.u32 2147483647, %v3264_v20  ;;  %vm1408_vm4 = vmor %vm1406_vm3, %vm1407_vm1  ;;  %v1413_v12 = vor.u32 1.1754944e-38, %v1412_v17  ;;  %v3315_v60 = vpop.permute.xlu0 %1273  ;;  %v1168_v29 = vld [vmem:[#allocation2 + $0x30] sm:$0xff] }
 0x245   : > { %v1445_v34 = vmul.f32 %v1444_v31, %v1165_v28  ;;  %v1652_v41 = vand.u32 2147483648, %v3264_v20  ;;  %2380 = vrcp.f32 %v3280_v26  ;;  %v2377_v43 = vpop.eup %2376  ;;  %v1409_v44 = vsel %vm1408_vm4, %v2375_v63, %v1405_v33 }
 0x246   : > { %v1884_v23 = vadd.f32 %v3178_v42, %v1610_v18  ;;  %vm1411_vm5 = vcmp.eq.f32.partialorder %v1410_v10, 8.507059e+37  ;;  %v1500_v13 = vand.u32 2147483647, %v3266_v21  ;;  %v1642_v46 = vmul.f32 %v2377_v43, %v3264_v20 }
 0x247   : > { %v1873_v35 = vadd.f32 %v3178_v42, %v1445_v34  ;;  %v1414_v25 = vsel %vm1411_vm5, %v1413_v12, %v1409_v44  ;;  %vm1646_vm6 = vweird.f32 %v3264_v20  ;;  %vm3300_vm7 = vcmp.eq.f32.partialorder %v1650_v16, 8.507059e+37  ;;  %v1169_v20 = vld [vmem:[#allocation2 + $0x48] sm:$0xff] }
 0x248   : > { %v1916_v24 = vmax.f32 %v1884_v23, 0.0  ;;  %v2379_v49 = vpop.eup %2378  ;;  %v1415_v37 = vmul.f32 %v1414_v25, %v1163_v36  ;;  %vm1496_vm8 = vweird.f32 %v3266_v21  ;;  %v1643_v27 = vsub.f32 1.0, %v1642_v46 }
 0x249   : > { %v1905_v51 = vmax.f32 %v1873_v35, 0.0  ;;  %v1653_v52 = vor.u32 1.1754944e-38, %v1652_v41  ;;  %v1492_v53 = vmul.f32 %v2379_v49, %v3266_v21  ;;  %vm3307_vm9 = vcmp.eq.f32.partialorder %v1500_v13, 8.507059e+37 }
 0x24a   : > { %1948 = vst [vmem:[%s2862_s28 + $0x70] sm:$0xff] %v1916_v24  ;;  %v1871_v54 = vadd.f32 %v3178_v42, %v1415_v37  ;;  %v1502_v1 = vand.u32 2147483648, %v3266_v21  ;;  %2382 = vrcp.f32 %v3294_v47  ;;  %v1644_v56 = vmul.f32 %v2377_v43, %v1643_v27  ;;  %v3353_v34 = vpop.permute.xlu2 %1343 }
 0x24b   : > { %v2381_v55 = vpop.eup %2380  ;;  %1937 = vst [vmem:[%s2862_s28 + $0x18] sm:$0xff] %v1905_v51  ;;  %vm1647_vm10 = vweird.f32 %v2377_v43  ;;  %v1493_v38 = vsub.f32 1.0, %v1492_v53  ;;  %v1485_v40 = vand.u32 2147483647, %v3280_v26  ;;  %v1487_v61 = vand.u32 2147483648, %v3280_v26  ;;  %v3338_v11 = vpop.permute.xlu1 %1293  ;;  %v1182_v51 = vld [vmem:[#allocation2 + $0xe0] sm:$0xff] }
 0x24c   : > { %v1903_v57 = vmax.f32 %v1871_v54, 0.0  ;;  %v1477_v59 = vmul.f32 %v2381_v55, %v3280_v26  ;;  %2384 = vrcp.f32 %v3296_v48  ;;  %v1645_v63 = vadd.f32 %v2377_v43, %v1644_v56  ;;  %vm1648_vm13 = vmor %vm1646_vm6, %vm1647_vm10  ;;  %v3358_v24 = vpop.permute.xlu0 %1288 }
 0x24d   : > { %v1494_v58 = vmul.f32 %v2379_v49, %v1493_v38  ;;  %vm1497_vm11 = vweird.f32 %v2379_v49  ;;  %vm1481_vm12 = vweird.f32 %v3280_v26  ;;  %v1503_v0 = vor.u32 1.1754944e-38, %v1502_v1 }
 0x24e   : > { %1935 = vst [vmem:[%s2862_s28 + $0x8] sm:$0xff] %v1903_v57  ;;  %v1478_v2 = vsub.f32 1.0, %v1477_v59  ;;  %v1695_v3 = vand.u32 2147483647, %v3294_v47  ;;  %v1697_v39 = vand.u32 2147483648, %v3294_v47  ;;  %v1649_v19 = vsel %vm1648_vm13, %v2377_v43, %v1645_v63  ;;  %vm1498_vm15 = vmor %vm1496_vm8, %vm1497_vm11 }
 0x24f   : > { %v1495_v4 = vadd.f32 %v2379_v49, %v1494_v58  ;;  %vm3326_vm14 = vcmp.eq.f32.partialorder %v1485_v40, 8.507059e+37  ;;  %2386 = vrcp.f32 %v3315_v60  ;;  %v1654_v7 = vsel %vm3300_vm7, %v1653_v52, %v1649_v19 }
 0x250   : > { %v2383_v6 = vpop.eup %2382  ;;  %v1479_v30 = vmul.f32 %v2381_v55, %v1478_v2  ;;  %vm1482_vm0 = vweird.f32 %v2381_v55  ;;  %v1488_v32 = vor.u32 1.1754944e-38, %v1487_v61  ;;  %v1655_v8 = vmul.f32 %v1654_v7, %v1179_v62 }
 0x251   : > { %v1499_v9 = vsel %vm1498_vm15, %v2379_v49, %v1495_v4  ;;  %v1687_v10 = vmul.f32 %v2383_v6, %v3294_v47  ;;  %vm1691_vm1 = vweird.f32 %v3294_v47  ;;  %vm3342_vm2 = vcmp.eq.f32.partialorder %v1695_v3, 8.507059e+37  ;;  %vm1483_vm3 = vmor %vm1481_vm12, %vm1482_vm0  ;;  %v1172_v47 = vld [vmem:[#allocation2 + $0xe8] sm:$0xff] }
 0x252   : > { %v2385_v14 = vpop.eup %2384  ;;  %v1504_v15 = vsel %vm3307_vm9, %v1503_v0, %v1499_v9  ;;  %v1480_v17 = vadd.f32 %v2381_v55, %v1479_v30  ;;  %v1698_v21 = vor.u32 1.1754944e-38, %v1697_v39  ;;  %v1887_v28 = vadd.f32 %v3178_v42, %v1655_v8  ;;  %v1171_v0 = vld [vmem:[#allocation2 + $0x88] sm:$0xff]  ;;  %v3390_v4 = vpop.permute.xlu2 %1358 }
 0x253   : > { %v1505_v22 = vmul.f32 %v1504_v15, %v1169_v20  ;;  %v1688_v23 = vsub.f32 1.0, %v1687_v10  ;;  %v1537_v31 = vmul.f32 %v2385_v14, %v3296_v48  ;;  %vm1692_vm4 = vweird.f32 %v2383_v6  ;;  %v3377_v57 = vpop.permute.xlu1 %1308 }
 0x254   : > { %v1484_v33 = vsel %vm1483_vm3, %v2381_v55, %v1480_v17  ;;  %vm1541_vm5 = vweird.f32 %v3296_v48  ;;  %v1545_v16 = vand.u32 2147483647, %v3296_v48  ;;  %v1919_v12 = vmax.f32 %v1887_v28, 0.0  ;;  %vm1693_vm6 = vmor %vm1691_vm1, %vm1692_vm4  ;;  %v3396_v30 = vpop.permute.xlu0 %1303 }
 0x255   : > { %v2387_v36 = vpop.eup %2386  ;;  %v1877_v41 = vadd.f32 %v3178_v42, %v1505_v22  ;;  %v1489_v26 = vsel %vm3326_vm14, %v1488_v32, %v1484_v33  ;;  %v1689_v43 = vmul.f32 %v2383_v6, %v1688_v23  ;;  %v1538_v13 = vsub.f32 1.0, %v1537_v31 }
 0x256   : > { %v1490_v44 = vmul.f32 %v1489_v26, %v1168_v29  ;;  %v1547_v35 = vand.u32 2147483648, %v3296_v48  ;;  %v1522_v25 = vmul.f32 %v2387_v36, %v3315_v60  ;;  %1951 = vst [vmem:[%s2862_s28 + $0x88] sm:$0xff] %v1919_v12  ;;  %v1530_v37 = vand.u32 2147483647, %v3315_v60 }
 0x257   : > { %v1909_v46 = vmax.f32 %v1877_v41, 0.0  ;;  %v1690_v49 = vadd.f32 %v2383_v6, %v1689_v43  ;;  %2388 = vrcp.f32 %v3353_v34  ;;  %v1539_v27 = vmul.f32 %v2385_v14, %v1538_v13  ;;  %v1185_v41 = vld [vmem:[#allocation2 + $0xc0] sm:$0xff] }
 0x258   : > { %v1876_v50 = vadd.f32 %v3178_v42, %v1490_v44  ;;  %vm1542_vm7 = vweird.f32 %v2385_v14  ;;  %v1523_v52 = vsub.f32 1.0, %v1522_v25  ;;  %vm1527_vm8 = vweird.f32 %v2387_v36 }
 0x259   : > { %1941 = vst [vmem:[%s2862_s28 + $0x38] sm:$0xff] %v1909_v46  ;;  %v1694_v53 = vsel %vm1693_vm6, %v2383_v6, %v1690_v49  ;;  %v1532_v54 = vand.u32 2147483648, %v3315_v60  ;;  %2390 = vrcp.f32 %v3338_v11  ;;  %v1540_v55 = vadd.f32 %v2385_v14, %v1539_v27  ;;  %vm1543_vm9 = vmor %vm1541_vm5, %vm1542_vm7 }
 0x25a   : > { %v1908_v45 = vmax.f32 %v1876_v50, 0.0  ;;  %v1699_v1 = vsel %vm3342_vm2, %v1698_v21, %v1694_v53  ;;  %v1524_v56 = vmul.f32 %v2387_v36, %v1523_v52  ;;  %vm1546_vm10 = vcmp.eq.f32.partialorder %v1545_v16, 8.507059e+37 }
 0x25b   : > { %v1700_v38 = vmul.f32 %v1699_v1, %v1182_v51  ;;  %v1548_v40 = vor.u32 1.1754944e-38, %v1547_v35  ;;  %vm1526_vm11 = vweird.f32 %v3315_v60  ;;  %v1544_v59 = vsel %vm1543_vm9, %v2385_v14, %v1540_v55  ;;  %v3421_v13 = vpop.permute.xlu1 %1323 }
 0x25c   : > { %1940 = vst [vmem:[%s2862_s28 + $0x30] sm:$0xff] %v1908_v45  ;;  %v1525_v61 = vadd.f32 %v2387_v36, %v1524_v56  ;;  %vm3380_vm12 = vcmp.eq.f32.partialorder %v1530_v37, 8.507059e+37  ;;  %2392 = vrcp.f32 %v3358_v24  ;;  %vm1528_vm13 = vmor %vm1526_vm11, %vm1527_vm8  ;;  %v1533_v2 = vor.u32 1.1754944e-38, %v1532_v54  ;;  %v1175_v37 = vld [vmem:[#allocation2 + $0xf0] sm:$0xff]  ;;  %v3439_v55 = vpop.permute.xlu0 %1318 }
 0x25d   : > { %v2389_v63 = vpop.eup %2388  ;;  %v1890_v58 = vadd.f32 %v3178_v42, %v1700_v38  ;;  %v1549_v48 = vsel %vm1546_vm10, %v1548_v40, %v1544_v59  ;;  %vm1736_vm14 = vweird.f32 %v3353_v34  ;;  %v1740_v19 = vand.u32 2147483647, %v3353_v34 }
 0x25e   : > { %v1550_v60 = vmul.f32 %v1549_v48, %v1172_v47  ;;  %v1529_v3 = vsel %vm1528_vm13, %v2387_v36, %v1525_v61  ;;  %v1732_v39 = vmul.f32 %v2389_v63, %v3353_v34  ;;  %v1742_v20 = vand.u32 2147483648, %v3353_v34  ;;  %v1174_v47 = vld [vmem:[#allocation2 + $0x60] sm:$0xff] }
 0x25f   : > { %v2391_v5 = vpop.eup %2390  ;;  %v1922_v6 = vmax.f32 %v1890_v58, 0.0  ;;  %v1534_v7 = vsel %vm3380_vm12, %v1533_v2, %v1529_v3  ;;  %vm1586_vm15 = vweird.f32 %v3338_v11  ;;  %vm1737_vm0 = vweird.f32 %v2389_v63 }
 0x260   : > { %v1880_v32 = vadd.f32 %v3178_v42, %v1550_v60  ;;  %v1535_v8 = vmul.f32 %v1534_v7, %v1171_v0  ;;  %v1733_v9 = vsub.f32 1.0, %v1732_v39  ;;  %v1582_v10 = vmul.f32 %v2391_v5, %v3338_v11  ;;  %vm1738_vm3 = vmor %vm1736_vm14, %vm1737_vm0 }
 0x261   : > { %1954 = vst [vmem:[%s2862_s28 + $0xa0] sm:$0xff] %v1922_v6  ;;  %v1590_v14 = vand.u32 2147483647, %v3338_v11  ;;  %v1592_v15 = vand.u32 2147483648, %v3338_v11  ;;  %2394 = vrcp.f32 %v3390_v4  ;;  %vm3405_vm1 = vcmp.eq.f32.partialorder %v1740_v19, 8.507059e+37 }
 0x262   : > { %v2393_v17 = vpop.eup %2392  ;;  %v1912_v18 = vmax.f32 %v1880_v32, 0.0  ;;  %v1879_v21 = vadd.f32 %v3178_v42, %v1535_v8  ;;  %v1734_v28 = vmul.f32 %v2389_v63, %v1733_v9  ;;  %v1583_v22 = vsub.f32 1.0, %v1582_v10 }
 0x263   : > { %vm1587_vm2 = vweird.f32 %v2391_v5  ;;  %v1567_v23 = vmul.f32 %v2393_v17, %v3358_v24  ;;  %v1575_v31 = vand.u32 2147483647, %v3358_v24  ;;  %v1577_v12 = vand.u32 2147483648, %v3358_v24  ;;  %v3463_v10 = vpop.permute.xlu1 %1338 }
 0x264   : > { %1944 = vst [vmem:[%s2862_s28 + $0x50] sm:$0xff] %v1912_v18  ;;  %v1911_v33 = vmax.f32 %v1879_v21, 0.0  ;;  %v1735_v16 = vadd.f32 %v2389_v63, %v1734_v28  ;;  %v1584_v36 = vmul.f32 %v2391_v5, %v1583_v22  ;;  %v1743_v26 = vor.u32 1.1754944e-38, %v1742_v20  ;;  %vm1588_vm6 = vmor %vm1586_vm15, %vm1587_vm2  ;;  %v1188_v20 = vld [vmem:[#allocation2 + $0x10] sm:$0xff] }
 0x265   : > { %vm3416_vm4 = vcmp.eq.f32.partialorder %v1590_v14, 8.507059e+37  ;;  %v1568_v44 = vsub.f32 1.0, %v1567_v23  ;;  %2396 = vrcp.f32 %v3377_v57  ;;  %v1593_v46 = vor.u32 1.1754944e-38, %v1592_v15 }
 0x266   : > { %1943 = vst [vmem:[%s2862_s28 + $0x48] sm:$0xff] %v1911_v33  ;;  %v1739_v35 = vsel %vm1738_vm3, %v2389_v63, %v1735_v16  ;;  %v1585_v25 = vadd.f32 %v2391_v5, %v1584_v36  ;;  %vm1571_vm5 = vweird.f32 %v3358_v24  ;;  %vm1572_vm7 = vweird.f32 %v2393_v17  ;;  %v3447_v63 = vpop.permute.xlu2 %1373  ;;  %v3478_v36 = vpop.permute.xlu0 %1333 }
 0x267   : > { %v2395_v49 = vpop.eup %2394  ;;  %v1744_v34 = vsel %vm3405_vm1, %v1743_v26, %v1739_v35  ;;  %v1569_v50 = vmul.f32 %v2393_v17, %v1568_v44  ;;  %vm3430_vm8 = vcmp.eq.f32.partialorder %v1575_v31, 8.507059e+37  ;;  %v1578_v53 = vor.u32 1.1754944e-38, %v1577_v12  ;;  %vm1573_vm10 = vmor %vm1571_vm5, %vm1572_vm7  ;;  %v1178_v26 = vld [vmem:[#allocation2 + $0x38] sm:$0xff] }
 0x268   : > { %v1745_v27 = vmul.f32 %v1744_v34, %v1185_v41  ;;  %v1589_v52 = vsel %vm1588_vm6, %v2391_v5, %v1585_v25  ;;  %v1777_v54 = vmul.f32 %v2395_v49, %v3390_v4  ;;  %vm1781_vm9 = vweird.f32 %v3390_v4 }
 0x269   : > { %v1594_v45 = vsel %vm3416_vm4, %v1593_v46, %v1589_v52  ;;  %v1570_v1 = vadd.f32 %v2393_v17, %v1569_v50  ;;  %v1787_v11 = vand.u32 2147483648, %v3390_v4  ;;  %2398 = vrcp.f32 %v3396_v30  ;;  %v1177_v52 = vld [vmem:[#allocation2 + $0x78] sm:$0xff] }
 0x26a   : > { %v1893_v56 = vadd.f32 %v3178_v42, %v1745_v27  ;;  %v1595_v38 = vmul.f32 %v1594_v45, %v1175_v37  ;;  %v1778_v40 = vsub.f32 1.0, %v1777_v54  ;;  %vm1782_vm11 = vweird.f32 %v2395_v49 }
 0x26b   : > { %v2397_v59 = vpop.eup %2396  ;;  %v1574_v61 = vsel %vm1573_vm10, %v2393_v17, %v1570_v1  ;;  %v1785_v62 = vand.u32 2147483647, %v3390_v4  ;;  %vm1631_vm12 = vweird.f32 %v3377_v57  ;;  %v1788_v60 = vor.u32 1.1754944e-38, %v1787_v11  ;;  %vm1783_vm13 = vmor %vm1781_vm9, %vm1782_vm11 }
 0x26c   : > { %v1925_v58 = vmax.f32 %v1893_v56, 0.0  ;;  %v1883_v48 = vadd.f32 %v3178_v42, %v1595_v38  ;;  %v1579_v24 = vsel %vm3430_vm8, %v1578_v53, %v1574_v61  ;;  %v1779_v0 = vmul.f32 %v2395_v49, %v1778_v40  ;;  %v3503_v38 = vpop.permute.xlu1 %1353  ;;  %v3561_v53 = vld [vmem:[%s3748_s11] ss:$0 sm:$0xff] }
 0x26d   : > { %v1580_v2 = vmul.f32 %v1579_v24, %v1174_v47  ;;  %v1627_v3 = vmul.f32 %v2397_v59, %v3377_v57  ;;  %v1635_v39 = vand.u32 2147483647, %v3377_v57  ;;  %v1637_v6 = vand.u32 2147483648, %v3377_v57  ;;  %v1191_v24 = vld [vmem:[#allocation2 + $0xf8] sm:$0xff] }
 0x26e   : > { %1957 = vst [vmem:[%s2862_s28 + $0xb8] sm:$0xff] %v1925_v58  ;;  %v1915_v19 = vmax.f32 %v1883_v48, 0.0  ;;  %v1780_v5 = vadd.f32 %v2395_v49, %v1779_v0  ;;  %2400 = vrcp.f32 %v3447_v63  ;;  %v1620_v8 = vand.u32 2147483647, %v3396_v30 }
 0x26f   : > { %v1882_v7 = vadd.f32 %v3178_v42, %v1580_v2  ;;  %v1628_v32 = vsub.f32 1.0, %v1627_v3  ;;  %v1622_v9 = vand.u32 2147483648, %v3396_v30  ;;  %v2399_v14 = vpop.eup %2398  ;;  %vm1786_vm14 = vcmp.eq.f32.partialorder %v1785_v62, 8.507059e+37 }
 0x270   : > { %1947 = vst [vmem:[%s2862_s28 + $0x68] sm:$0xff] %v1915_v19  ;;  %v1784_v15 = vsel %vm1783_vm13, %v2395_v49, %v1780_v5  ;;  %vm1632_vm15 = vweird.f32 %v2397_v59  ;;  %2402 = vrcp.f32 %v3421_v13  ;;  %v1612_v4 = vmul.f32 %v2399_v14, %v3396_v30  ;;  %v3521_v5 = vpop.permute.xlu0 %1348 }
 0x271   : > { %v1914_v17 = vmax.f32 %v1882_v7, 0.0  ;;  %v1789_v18 = vsel %vm1786_vm14, %v1788_v60, %v1784_v15  ;;  %v1629_v21 = vmul.f32 %v2397_v59, %v1628_v32  ;;  %vm3468_vm0 = vcmp.eq.f32.partialorder %v1635_v39, 8.507059e+37  ;;  %vm1633_vm3 = vmor %vm1631_vm12, %vm1632_vm15  ;;  %v1181_v7 = vld [vmem:[#allocation2 + $0xc8] sm:$0xff] }
 0x272   : > { %v1790_v28 = vmul.f32 %v1789_v18, %v1188_v20  ;;  %v1638_v29 = vor.u32 1.1754944e-38, %v1637_v6  ;;  %vm1616_vm1 = vweird.f32 %v3396_v30  ;;  %v1613_v31 = vsub.f32 1.0, %v1612_v4 }
 0x273   : > { %1946 = vst [vmem:[%s2862_s28 + $0x60] sm:$0xff] %v1914_v17  ;;  %v1630_v23 = vadd.f32 %v2397_v59, %v1629_v21  ;;  %vm3474_vm2 = vcmp.eq.f32.partialorder %v1620_v8, 8.507059e+37  ;;  %v1623_v16 = vor.u32 1.1754944e-38, %v1622_v9  ;;  %vm1826_vm4 = vweird.f32 %v3447_v63 }
 0x274   : > { %v2401_v12 = vpop.eup %2400  ;;  %v1896_v41 = vadd.f32 %v3178_v42, %v1790_v28  ;;  %v1830_v43 = vand.u32 2147483647, %v3447_v63  ;;  %2404 = vrcp.f32 %v3439_v55  ;;  %v1614_v35 = vmul.f32 %v2399_v14, %v1613_v31 }
 0x275   : > { %v1634_v44 = vsel %vm1633_vm3, %v2397_v59, %v1630_v23  ;;  %vm1617_vm5 = vweird.f32 %v2399_v14  ;;  %v1822_v25 = vmul.f32 %v2401_v12, %v3447_v63  ;;  %v1832_v57 = vand.u32 2147483648, %v3447_v63 }
 0x276   : > { %v2403_v46 = vpop.eup %2402  ;;  %v1928_v49 = vmax.f32 %v1896_v41, 0.0  ;;  %v1639_v34 = vsel %vm3468_vm0, %v1638_v29, %v1634_v44  ;;  %vm1676_vm6 = vweird.f32 %v3421_v13  ;;  %v1615_v50 = vadd.f32 %v2399_v14, %v1614_v35  ;;  %vm1618_vm7 = vmor %vm1616_vm1, %vm1617_vm5  ;;  %v3545_v44 = vpop.permute.xlu1 %1368 }
 0x277   : > { %v1640_v37 = vmul.f32 %v1639_v34, %v1178_v26  ;;  %v1823_v51 = vsub.f32 1.0, %v1822_v25  ;;  %v1672_v27 = vmul.f32 %v2403_v46, %v3421_v13  ;;  %vm1827_vm8 = vweird.f32 %v2401_v12  ;;  %v1180_v26 = vld [vmem:[#allocation2 + $0x40] sm:$0xff] }
 0x278   : > { %1960 = vst [vmem:[%s2862_s28 + $0xd0] sm:$0xff] %v1928_v49  ;;  %vm3496_vm9 = vcmp.eq.f32.partialorder %v1830_v43, 8.507059e+37  ;;  %v1680_v54 = vand.u32 2147483647, %v3421_v13  ;;  %2406 = vrcp.f32 %v3463_v10  ;;  %v1619_v1 = vsel %vm1618_vm7, %v2399_v14, %v1615_v50  ;;  %vm1828_vm11 = vmor %vm1826_vm4, %vm1827_vm8 }
 0x279   : > { %v1886_v45 = vadd.f32 %v3178_v42, %v1640_v37  ;;  %v1824_v11 = vmul.f32 %v2401_v12, %v1823_v51  ;;  %v1673_v56 = vsub.f32 1.0, %v1672_v27  ;;  %v1624_v30 = vsel %vm3474_vm2, %v1623_v16, %v1619_v1  ;;  %v1184_v37 = vld [vmem:[#allocation2 + $0x70] sm:$0xff]  ;;  %v3556_v27 = vpop.permute.xlu0 %1363 }
 0x27a   : > { %v2405_v47 = vpop.eup %2404  ;;  %v1833_v40 = vor.u32 1.1754944e-38, %v1832_v57  ;;  %vm1677_vm10 = vweird.f32 %v2403_v46  ;;  %v1682_v59 = vand.u32 2147483648, %v3421_v13  ;;  %v1625_v62 = vmul.f32 %v1624_v30, %v1177_v52 }
 0x27b   : > { %v1918_v61 = vmax.f32 %v1886_v45, 0.0  ;;  %v1825_v58 = vadd.f32 %v2401_v12, %v1824_v11  ;;  %v1674_v48 = vmul.f32 %v2403_v46, %v1673_v56  ;;  %vm3511_vm12 = vcmp.eq.f32.partialorder %v1680_v54, 8.507059e+37  ;;  %vm1678_vm14 = vmor %vm1676_vm6, %vm1677_vm10 }
 0x27c   : > { %v1657_v2 = vmul.f32 %v2405_v47, %v3439_v55  ;;  %vm1661_vm13 = vweird.f32 %v3439_v55  ;;  %v1665_v60 = vand.u32 2147483647, %v3439_v55  ;;  %v1885_v3 = vadd.f32 %v3178_v42, %v1625_v62  ;;  %v1183_v62 = vld [vmem:[#allocation2 + $0x90] sm:$0xff] }
 0x27d   : > { %1950 = vst [vmem:[%s2862_s28 + $0x80] sm:$0xff] %v1918_v61  ;;  %v1829_v39 = vsel %vm1828_vm11, %v2401_v12, %v1825_v58  ;;  %v1675_v19 = vadd.f32 %v2403_v46, %v1674_v48  ;;  %2408 = vrcp.f32 %v3478_v36  ;;  %v1683_v20 = vor.u32 1.1754944e-38, %v1682_v59 }
 0x27e   : > { %v2407_v63 = vpop.eup %2406  ;;  %v1834_v6 = vsel %vm3496_vm9, %v1833_v40, %v1829_v39  ;;  %v1658_v32 = vsub.f32 1.0, %v1657_v2  ;;  %v1667_v8 = vand.u32 2147483648, %v3439_v55  ;;  %v1917_v9 = vmax.f32 %v1885_v3, 0.0 }
 0x27f   : > { %v1835_v14 = vmul.f32 %v1834_v6, %v1191_v24  ;;  %v1679_v15 = vsel %vm1678_vm14, %v2403_v46, %v1675_v19  ;;  %v1717_v17 = vmul.f32 %v2407_v63, %v3463_v10  ;;  %vm1662_vm15 = vweird.f32 %v2405_v47 }
 0x280   : > { %v1684_v18 = vsel %vm3511_vm12, %v1683_v20, %v1679_v15  ;;  %v1659_v21 = vmul.f32 %v2405_v47, %v1658_v32  ;;  %v1727_v4 = vand.u32 2147483648, %v3463_v10  ;;  %1949 = vst [vmem:[%s2862_s28 + $0x78] sm:$0xff] %v1917_v9  ;;  %vm3535_vm0 = vcmp.eq.f32.partialorder %v1665_v60, 8.507059e+37  ;;  %vm1663_vm1 = vmor %vm1661_vm13, %vm1662_vm15  ;;  %v1193_v32 = vld [vmem:[#allocation2 + $0x98] sm:$0xff] }
 0x281   : > { %v1899_v13 = vadd.f32 %v3178_v42, %v1835_v14  ;;  %v1685_v28 = vmul.f32 %v1684_v18, %v1181_v7  ;;  %v1718_v29 = vsub.f32 1.0, %v1717_v17  ;;  %v1668_v31 = vor.u32 1.1754944e-38, %v1667_v8  ;;  %v1187_v17 = vld [vmem:[#allocation2 + $0xd0] sm:$0xff] }
 0x282   : > { %v1660_v23 = vadd.f32 %v2405_v47, %v1659_v21  ;;  %v1725_v33 = vand.u32 2147483647, %v3463_v10  ;;  %2410 = vrcp.f32 %v3503_v38  ;;  %vm1722_vm2 = vweird.f32 %v2407_v63 }
 0x283   : > { %v2409_v16 = vpop.eup %2408  ;;  %v1931_v12 = vmax.f32 %v1899_v13, 0.0  ;;  %v1889_v41 = vadd.f32 %v3178_v42, %v1685_v28  ;;  %v1719_v43 = vmul.f32 %v2407_v63, %v1718_v29  ;;  %vm1721_vm3 = vweird.f32 %v3463_v10  ;;  %v3598_v13 = vpop.permute.xlu0 %1378 }
 0x284   : > { %v1664_v35 = vsel %vm1663_vm1, %v2405_v47, %v1660_v23  ;;  %v1728_v25 = vor.u32 1.1754944e-38, %v1727_v4  ;;  %v1702_v46 = vmul.f32 %v2409_v16, %v3478_v36  ;;  %v1710_v55 = vand.u32 2147483647, %v3478_v36  ;;  %vm1723_vm4 = vmor %vm1721_vm3, %vm1722_vm2 }
 0x285   : > { %1963 = vst [vmem:[%s2862_s28 + $0xe8] sm:$0xff] %v1931_v12  ;;  %v1921_v49 = vmax.f32 %v1889_v41, 0.0  ;;  %v1669_v42 = vsel %vm3535_vm0, %v1668_v31, %v1664_v35  ;;  %v1720_v34 = vadd.f32 %v2407_v63, %v1719_v43  ;;  %v1712_v51 = vand.u32 2147483648, %v3478_v36 }
 0x286   : > { %v1670_v57 = vmul.f32 %v1669_v42, %v1180_v26  ;;  %v1703_v50 = vsub.f32 1.0, %v1702_v46  ;;  %2412 = vrcp.f32 %v3521_v5  ;;  %vm1726_vm5 = vcmp.eq.f32.partialorder %v1725_v33, 8.507059e+37  ;;  %v1186_v26 = vld [vmem:[#allocation2 + $0xa8] sm:$0xff] }
 0x287   : > { %1953 = vst [vmem:[%s2862_s28 + $0x98] sm:$0xff] %v1921_v49  ;;  %v1724_v10 = vsel %vm1723_vm4, %v2407_v63, %v1720_v34  ;;  %vm1707_vm6 = vweird.f32 %v2409_v16  ;;  %vm1706_vm7 = vweird.f32 %v3478_v36  ;;  %vm3565_vm8 = vcmp.eq.f32.partialorder %v1710_v55, 8.507059e+37  ;;  %v3580_v63 = vpop.permute.xlu1 %1383 }
 0x288   : > { %v2411_v52 = vpop.eup %2410  ;;  %v1888_v54 = vadd.f32 %v3561_v53, %v1670_v57  ;;  %v1729_v45 = vsel %vm1726_vm5, %v1728_v25, %v1724_v10  ;;  %v1704_v1 = vmul.f32 %v2409_v16, %v1703_v50  ;;  %v1713_v59 = vor.u32 1.1754944e-38, %v1712_v51  ;;  %vm1708_vm9 = vmor %vm1706_vm7, %vm1707_vm6  ;;  %v1190_v10 = vld [vmem:[#allocation2 + $0xa0] sm:$0xff] }
 0x289   : > { %v1730_v11 = vmul.f32 %v1729_v45, %v1184_v37  ;;  %v1762_v47 = vmul.f32 %v2411_v52, %v3503_v38  ;;  %2414 = vrcp.f32 %v3545_v44  ;;  %v1770_v48 = vand.u32 2147483647, %v3503_v38 }
 0x28a   : > { %v1920_v30 = vmax.f32 %v1888_v54, 0.0  ;;  %v1705_v40 = vadd.f32 %v2409_v16, %v1704_v1  ;;  %v1772_v36 = vand.u32 2147483648, %v3503_v38  ;;  %vm1767_vm10 = vweird.f32 %v2411_v52 }
 0x28b   : > { %v1892_v61 = vadd.f32 %v3561_v53, %v1730_v11  ;;  %v1763_v58 = vsub.f32 1.0, %v1762_v47  ;;  %v1755_v2 = vand.u32 2147483647, %v3521_v5  ;;  %2416 = vrcp.f32 %v3556_v27  ;;  %v1189_v47 = vld [vmem:[#allocation2 + $0x28] sm:$0xff] }
 0x28c   : > { %v2413_v24 = vpop.eup %2412  ;;  %1952 = vst [vmem:[%s2862_s28 + $0x90] sm:$0xff] %v1920_v30  ;;  %v1709_v0 = vsel %vm1708_vm9, %v2409_v16, %v1705_v40  ;;  %vm1766_vm11 = vweird.f32 %v3503_v38  ;;  %v1757_v7 = vand.u32 2147483648, %v3521_v5  ;;  %vm3585_vm12 = vcmp.eq.f32.partialorder %v1770_v48, 8.507059e+37  ;;  %v1192_v38 = vld [vmem:[#allocation2 + $0x20] sm:$0xff] }
 0x28d   : > { %v1924_v60 = vmax.f32 %v1892_v61, 0.0  ;;  %v1714_v3 = vsel %vm3565_vm8, %v1713_v59, %v1709_v0  ;;  %v1764_v39 = vmul.f32 %v2411_v52, %v1763_v58  ;;  %v1747_v19 = vmul.f32 %v2413_v24, %v3521_v5  ;;  %vm1768_vm13 = vmor %vm1766_vm11, %vm1767_vm10 }
 0x28e   : > { %v1715_v6 = vmul.f32 %v1714_v3, %v1183_v62  ;;  %v1773_v8 = vor.u32 1.1754944e-38, %v1772_v36  ;;  %vm1751_vm14 = vweird.f32 %v3521_v5  ;;  %vm3592_vm15 = vcmp.eq.f32.partialorder %v1755_v2, 8.507059e+37 }
 0x28f   : > { %1956 = vst [vmem:[%s2862_s28 + $0xb0] sm:$0xff] %v1924_v60  ;;  %v1765_v20 = vadd.f32 %v2411_v52, %v1764_v39  ;;  %v1748_v9 = vsub.f32 1.0, %v1747_v19  ;;  %v2415_v14 = vpop.eup %2414  ;;  %2418 = vrcp.f32 %v3580_v63  ;;  %vm1752_vm0 = vweird.f32 %v2413_v24 }
 0x290   : > { %v1891_v15 = vadd.f32 %v3561_v53, %v1715_v6  ;;  %v1807_v4 = vmul.f32 %v2415_v14, %v3545_v44  ;;  %v1758_v23 = vor.u32 1.1754944e-38, %v1757_v7  ;;  %v1815_v31 = vand.u32 2147483647, %v3545_v44  ;;  %vm1753_vm1 = vmor %vm1751_vm14, %vm1752_vm0 }
 0x291   : > { %v1769_v18 = vsel %vm1768_vm13, %v2411_v52, %v1765_v20  ;;  %v1749_v21 = vmul.f32 %v2413_v24, %v1748_v9  ;;  %v2417_v28 = vpop.eup %2416  ;;  %vm1812_vm2 = vweird.f32 %v2415_v14  ;;  %v1817_v43 = vand.u32 2147483648, %v3545_v44 }
 0x292   : > { %v1923_v22 = vmax.f32 %v1891_v15, 0.0  ;;  %v1774_v29 = vsel %vm3585_vm12, %v1773_v8, %v1769_v18  ;;  %v1808_v12 = vsub.f32 1.0, %v1807_v4  ;;  %v1792_v41 = vmul.f32 %v2417_v28, %v3556_v27 }
 0x293   : > { %v1775_v33 = vmul.f32 %v1774_v29, %v1187_v17  ;;  %v1750_v16 = vadd.f32 %v2413_v24, %v1749_v21  ;;  %v1800_v35 = vand.u32 2147483647, %v3556_v27  ;;  %2420 = vrcp.f32 %v3598_v13 }
 0x294   : > { %1955 = vst [vmem:[%s2862_s28 + $0xa8] sm:$0xff] %v1923_v22  ;;  %v1809_v49 = vmul.f32 %v2415_v14, %v1808_v12  ;;  %v1793_v42 = vsub.f32 1.0, %v1792_v41  ;;  %vm1811_vm3 = vweird.f32 %v3545_v44  ;;  %vm1797_vm4 = vweird.f32 %v2417_v28 }
 0x295   : > { %v1895_v25 = vadd.f32 %v3561_v53, %v1775_v33  ;;  %v1754_v46 = vsel %vm1753_vm1, %v2413_v24, %v1750_v16  ;;  %v2419_v34 = vpop.eup %2418  ;;  %v1802_v5 = vand.u32 2147483648, %v3556_v27  ;;  %vm1813_vm5 = vmor %vm1811_vm3, %vm1812_vm2  ;;  %vm1816_vm6 = vcmp.eq.f32.partialorder %v1815_v31, 8.507059e+37 }
 0x296   : > { %v1759_v55 = vsel %vm3592_vm15, %v1758_v23, %v1754_v46  ;;  %v1810_v50 = vadd.f32 %v2415_v14, %v1809_v49  ;;  %v1794_v51 = vmul.f32 %v2417_v28, %v1793_v42  ;;  %v1818_v52 = vor.u32 1.1754944e-38, %v1817_v43 }
 0x297   : > { %v1927_v57 = vmax.f32 %v1895_v25, 0.0  ;;  %v1760_v37 = vmul.f32 %v1759_v55, %v1186_v26  ;;  %vm1796_vm7 = vweird.f32 %v3556_v27  ;;  %v1852_v54 = vmul.f32 %v2419_v34, %v3580_v63 }
 0x298   : > { %v1814_v44 = vsel %vm1813_vm5, %v2415_v14, %v1810_v50  ;;  %v1795_v1 = vadd.f32 %v2417_v28, %v1794_v51  ;;  %vm1801_vm8 = vcmp.eq.f32.partialorder %v1800_v35, 8.507059e+37  ;;  %vm1798_vm9 = vmor %vm1796_vm7, %vm1797_vm4  ;;  %v1803_v30 = vor.u32 1.1754944e-38, %v1802_v5 }
 0x299   : > { %1959 = vst [vmem:[%s2862_s28 + $0xc8] sm:$0xff] %v1927_v57  ;;  %v1894_v45 = vadd.f32 %v3561_v53, %v1760_v37  ;;  %v2421_v11 = vpop.eup %2420  ;;  %v1819_v56 = vsel %vm1816_vm6, %v1818_v52, %v1814_v44  ;;  %v1853_v40 = vsub.f32 1.0, %v1852_v54  ;;  %v1862_v59 = vand.u32 2147483648, %v3580_v63 }
 0x29a   : > { %v1820_v27 = vmul.f32 %v1819_v56, %v1190_v10  ;;  %v1799_v62 = vsel %vm1798_vm9, %v2417_v28, %v1795_v1  ;;  %v1837_v58 = vmul.f32 %v2421_v11, %v3598_v13  ;;  %vm1857_vm10 = vweird.f32 %v2419_v34 }
 0x29b   : > { %v1926_v61 = vmax.f32 %v1894_v45, 0.0  ;;  %v1804_v48 = vsel %vm1801_vm8, %v1803_v30, %v1799_v62  ;;  %v1854_v36 = vmul.f32 %v2419_v34, %v1853_v40  ;;  %v1860_v24 = vand.u32 2147483647, %v3580_v63 }
 0x29c   : > { %v1898_v0 = vadd.f32 %v3561_v53, %v1820_v27  ;;  %v1805_v2 = vmul.f32 %v1804_v48, %v1189_v47  ;;  %vm1856_vm11 = vweird.f32 %v3580_v63  ;;  %v1838_v60 = vsub.f32 1.0, %v1837_v58 }
 0x29d   : > { %1958 = vst [vmem:[%s2862_s28 + $0xc0] sm:$0xff] %v1926_v61  ;;  %v1855_v3 = vadd.f32 %v2419_v34, %v1854_v36  ;;  %v1863_v39 = vor.u32 1.1754944e-38, %v1862_v59  ;;  %v1845_v19 = vand.u32 2147483647, %v3598_v13  ;;  %v1847_v6 = vand.u32 2147483648, %v3598_v13  ;;  %vm1858_vm12 = vmor %vm1856_vm11, %vm1857_vm10 }
 0x29e   : > { %v1930_v7 = vmax.f32 %v1898_v0, 0.0  ;;  %v1897_v20 = vadd.f32 %v3561_v53, %v1805_v2  ;;  %v1839_v8 = vmul.f32 %v2421_v11, %v1838_v60  ;;  %vm1842_vm13 = vweird.f32 %v2421_v11 }
 0x29f   : > { %v1859_v9 = vsel %vm1858_vm12, %v2419_v34, %v1855_v3  ;;  %vm1861_vm14 = vcmp.eq.f32.partialorder %v1860_v24, 8.507059e+37  ;;  %vm1841_vm15 = vweird.f32 %v3598_v13  ;;  %v1848_v18 = vor.u32 1.1754944e-38, %v1847_v6 }
 0x2a0   : > { %1962 = vst [vmem:[%s2862_s28 + $0xe0] sm:$0xff] %v1930_v7  ;;  %v1929_v14 = vmax.f32 %v1897_v20, 0.0  ;;  %v1864_v63 = vsel %vm1861_vm14, %v1863_v39, %v1859_v9  ;;  %v1840_v15 = vadd.f32 %v2421_v11, %v1839_v8  ;;  %vm1843_vm0 = vmor %vm1841_vm15, %vm1842_vm13  ;;  %vm1846_vm1 = vcmp.eq.f32.partialorder %v1845_v19, 8.507059e+37 }
 0x2a1   : > { %v1865_v17 = vmul.f32 %v1864_v63, %v1193_v32 }
 0x2a2   : > { %1961 = vst [vmem:[%s2862_s28 + $0xd8] sm:$0xff] %v1929_v14  ;;  %v1844_v21 = vsel %vm1843_vm0, %v2421_v11, %v1840_v15 }
 0x2a3   : > { %v1901_v4 = vadd.f32 %v3561_v53, %v1865_v17  ;;  %v1849_v28 = vsel %vm1846_vm1, %v1848_v18, %v1844_v21 }
 0x2a4   : > { %v1850_v22 = vmul.f32 %v1849_v28, %v1192_v38 }
 0x2a5   : > { %v1933_v29 = vmax.f32 %v1901_v4, 0.0 }
 0x2a6   : > { %v1900_v23 = vadd.f32 %v3561_v53, %v1850_v22 }
 0x2a7   : > { %1965 = vst [vmem:[%s2862_s28 + $0xf8] sm:$0xff] %v1933_v29 }
 0x2a8   : > { %v1932_v31 = vmax.f32 %v1900_v23, 0.0 }
 0x2aa   : > { %1964 = vst [vmem:[%s2862_s28 + $0xf0] sm:$0xff] %v1932_v31 }
 0x2ab PF: > { %s3791_s20 = sld [smem:[#allocation17_spill]]  ;;  %s1979_s30 = sshll.u32 %s2862_s28, 4  ;;  %s1980_s30 = int_to_ptr.vmem [resolvable:$true] %s1979_s30 }
 0x2ac   : > { %s3794_s22 = sld [smem:[#allocation24_spill]]  ;;  %s1967_s29 = scalar_lea.sflag [#allocation6], %s247_s3 }
 0x2b1   : > { %s2197_s2 = sshll.u32 %s3791_s20, 8 }
 0x2b2   : > { %s3795_s9 = smov %s3794_s22  ;;  %s1978_s8 = scalar_lea.hbm %s3794_s22, %s2197_s2 }
 0x2b3   : > { %s1981_s7 = sshll.u32 %s1978_s8, 4  ;;  %s2503_s4 = scalar_lea.hbm %s3795_s9, 512  ;;  %s1982_s7 = int_to_ptr.hbm [resolvable:$true] %s1981_s7 }
 0x2b4   : > { %s2497_s5 = sshra.s32 %s1982_s7, 4  ;;  %s2498_s5 = int_to_ptr.hbm [resolvable:$true] %s2497_s5 }
 0x2b5   : > { %s2499_s6 = scalar_lea.hbm %s2498_s5, 256  ;;  %p2504_p10 = scmp.lt.s32.totalorder %s2498_s5, %s3795_s9 }
 0x2b6   : > { %p2500_p7 = scmp.ne.s32.totalorder %s2498_s5, %s2499_s6  ;;  %p2505_p12 = scmp.lt.s32.totalorder %s2503_s4, %s2499_s6 }
 0x2b8   : > { %p2501_p9 = pnand %p2500_p7, %p2776_p11  ;;  %p2506_p3 = por %p2505_p12, %p2504_p10 }
 0x2ba   : > { %p2502_p4 = pneg %p2501_p9 }
 0x2bc   : > { %p2507_p0 = pnand %p2506_p3, %p2502_p4 }
 0x2be   : > { %2510 = shalt.err (!%p2507_p0)
}
 0x2bf   : > { %s2642_s3 = smov 128   ;;  %s2643_s28 = smov 8  }
 0x2c0   : > { %2218 = dma.vmem_to_hbm [thread:$0]  (%p2776_p11), %s1980_s30, 4096, %s1982_s7, %s1967_s29, %s2642_s3, %s2642_s3, %s2643_s28  }
 0x2c1 PF: > { %s3796_s10 = sld [smem:[#allocation13_spill]]  ;;  %p2232_p6 = scmp.ge.s32.totalorder %s2633_s25, 2 }
 0x2c3   : > { %p2228_p2 = pnand %p2232_p6, %p2781_p1 }
 0x2c5   : > { %p2229_p5 = pneg %p2228_p2 }
 0x2c7   : > { %s1996_s21 = sand.u32 1, %s3796_s10  }
 0x2c8   : > { %s1997_s22 = scalar_lea.sflag [#allocation6], %s1996_s21 }
 0x2c9   : > { %2576 = dma.done.wait (%p2229_p5), %s1997_s22, 4096  }
 0x2ca   : > { %2578 = vsyncadd (%p2229_p5), %s1997_s22, 4294963200  ;;  %s22_s25 = sadd.s32 1, %s2633_s25   ;;  %s3799_s12 = sld [smem:[#allocation14_spill]] }
 0x2cb   : > { %p3659_p8 = scmp.ge.s32.totalorder %s22_s25, 6   ;;  %s3800_s27 = sld [smem:[#allocation15_spill]] }
 0x2cc   : > { %s3801_s20 = sld [smem:[#allocation19_spill]]  ;;  %s3803_s13 = smov %s2589_s14 }
 0x2cd   : > { %s3802_s30 = sld [smem:[#allocation18_spill]]  ;;  %s3804_s14 = smov %s2830_s18 }
 0x2ce   : > { %s3805_s15 = smov %s2597_s16  ;;  %s3806_s16 = smov %s2601_s17 }
 0x2cf   : > { %s3807_s17 = smov %s2833_s0  ;;  %s3808_s18 = smov %s2609_s19 }
 0x2d0   : > { %s3810_s21 = smov %s2625_s23  ;;  %s3811_s22 = smov %s2629_s24 }
 0x2d1   : > { %s3809_s19 = smov %s3800_s27  ;;  %s3813_s24 = smov %s3819_s26 }
 0x2d2   :  { %21 = sbr.rel (!%p3659_p8) target bundleno = 16 (0x10), region = 98 }
 0x2d3   : > { %s3812_s23 = smov %s3802_s30 }
 0x2d7   :  { %2003 = vsyncpa [#allocation5], 1 }
 0x2d8   :  { %2005 = vsyncpa [#allocation5 + $0x1], 1 }
 0x2d9   :  { %2006 = vsyncpa [#allocation8], 1 }
 0x2da   :  { %2008 = vsyncpa [#allocation8 + $0x1], 1 }
 0x2db   :  { %2009 = vsyncpa [#allocation6], 1 }
 0x2dc   :  { %2011 = vsyncpa [#allocation6 + $0x1], 1 }

</bundles_post_ra>
